<compile_context>
chip_gen: v7x
topology: tpu7x:2x2x1
jax: 0.10.0
libtpu: 0.0.40
codegen_flags: <defaults>
</compile_context>

<pallas_src>
import functools

import numpy as np
import jax
import jax.numpy as jnp
from jax.experimental import pallas as pl
from jax.experimental.pallas import tpu as pltpu


# ---------------- fused forward kernel ----------------

def _make_kernel(n_conv, n_dense):
    """Kernel over refs: [x, (rh, rhs, bt, selh, selw) * n_conv,
                          wd1_slabs, bd1, (w, b) * (n_dense-1), out]."""

    def kernel(*refs):
        f32 = jnp.float32

        def mm(a, b):
            return jnp.dot(a, b, preferred_element_type=f32)

        x_ref = refs[0]
        pos = 1
        a = x_ref[0]                                # (H, W*C) lane-packed slab

        # --- conv blocks: conv(3x3, valid) + bias + ReLU + maxpool(2,2) ---
        for _ in range(n_conv):
            rh, rhs, bt, selh, selw = refs[pos:pos + 5]
            pos += 5
            acc = mm(mm(rh[0], a), rhs[0])          # kh = 0 row-shift matmul
            for k in range(1, rh.shape[0]):
                acc = acc + mm(mm(rh[k], a), rhs[k])
            act = jnp.maximum(acc + bt[...], 0.0)   # bias + ReLU  (rows=h, lanes=(w,c))
            # 2x2 max pool: exact 0/1 selection matmuls for the 4 window taps.
            hmx = jnp.maximum(mm(selh[0], act), mm(selh[1], act))
            a = jnp.maximum(mm(hmx, selw[0]), mm(hmx, selw[1]))

        # --- NCHW flatten folded into the first dense weight layout ---
        w0, b0 = refs[pos:pos + 2]
        pos += 2
        h = mm(a[0:1, :], w0[0])
        for r in range(1, w0.shape[0]):
            h = h + mm(a[r:r + 1, :], w0[r])
        h = h + b0[...]
        if n_dense > 1:
            h = jnp.maximum(h, 0.0)
        # TODO(synk): Dropout is inference-mode identity (no stochastic masking).

        # --- remaining dense layers (ReLU on all but the last) ---
        for di in range(1, n_dense):
            w, b = refs[pos:pos + 2]
            pos += 2
            h = mm(h, w[...]) + b[...]
            if di != n_dense - 1:
                h = jnp.maximum(h, 0.0)

        out_ref = refs[pos]
        out_ref[0] = h                               # (1, 128) lane-dense store

    return kernel


# ---------------- host-side one-time weight packing ----------------

def _build_consts(params, input_shape):
    """Pack conv weights as block-Toeplitz matrices, pooling as 0/1 selection
    matrices, and dense weights zero-padded to 128 lanes (done once)."""
    H, W, C = input_shape
    consts = []
    Hi, Wi, Ci = H, W, C

    for wgt, bias in params["conv"]:
        wnp = np.asarray(wgt, np.float32)            # (K, K, Ci, Co)
        bnp = np.asarray(bias, np.float32)
        K, Co = wnp.shape[0], wnp.shape[3]
        Hc, Wc = Hi - K + 1, Wi - K + 1              # conv 'valid' output
        Hp, Wp = (Hc - 2) // 2 + 1, (Wc - 2) // 2 + 1  # maxpool(2,2), floor

        rh = np.zeros((K, Hc, Hi), np.float32)       # per-kh row selection
        for kh in range(K):
            for ho in range(Hc):
                rh[kh, ho, ho + kh] = 1.0

        rhs = np.zeros((K, Wi * Ci, Wc * Co), np.float32)   # block-Toeplitz
        for kh in range(K):
            for wo in range(Wc):
                for kw in range(K):
                    wi_ = wo + kw
                    rhs[kh, wi_ * Ci:(wi_ + 1) * Ci,
                        wo * Co:(wo + 1) * Co] = wnp[kh, kw]

        bt = np.tile(bnp, Wc)[None, :]               # (1, Wc*Co)

        selh = np.zeros((2, Hp, Hc), np.float32)     # pool row taps
        for p in range(2):
            for i in range(Hp):
                selh[p, i, 2 * i + p] = 1.0

        selw = np.zeros((2, Wc * Co, Wp * Co), np.float32)  # pool col taps
        eye = np.eye(Co, dtype=np.float32)
        for p in range(2):
            for j in range(Wp):
                w_ = 2 * j + p
                selw[p, w_ * Co:(w_ + 1) * Co, j * Co:(j + 1) * Co] = eye

        consts += [rh, rhs, bt, selh, selw]
        Hi, Wi, Ci = Hp, Wp, Co

    dense = params["dense"]
    dims = [int(np.asarray(w).shape[1]) for (w, _) in dense]
    NP = max(128, -(-max(dims) // 128) * 128)        # pad outputs to 128 lanes
    n_classes = dims[-1]

    # first dense layer: fold the NCHW flatten (f = c*Hp*Wp + i*Wp + j)
    w0, b0 = dense[0]
    w0np, b0np = np.asarray(w0, np.float32), np.asarray(b0, np.float32)
    d0 = w0np.shape[1]
    wd1p = np.zeros((Hi, Wi * Ci, NP), np.float32)
    for i in range(Hi):
        for j in range(Wi):
            for c in range(Ci):
                f = c * (Hi * Wi) + i * Wi + j
                wd1p[i, j * Ci + c, :d0] = w0np[f, :]
    bd1p = np.zeros((1, NP), np.float32)
    bd1p[0, :d0] = b0np
    consts += [wd1p, bd1p]

    prev = d0
    for wgt, bias in dense[1:]:
        wnp, bnp = np.asarray(wgt, np.float32), np.asarray(bias, np.float32)
        d = wnp.shape[1]
        wp = np.zeros((NP, NP), np.float32)
        wp[:prev, :d] = wnp
        bp = np.zeros((1, NP), np.float32)
        bp[0, :d] = bnp
        consts += [wp, bp]
        prev = d

    consts = [jnp.asarray(a) for a in consts]
    meta = dict(n_conv=len(params["conv"]), n_dense=len(dense),
                n_classes=n_classes, NP=NP, H=H, W=W, C=C)
    return consts, meta


def _const_map(nd):
    return lambda b: (0,) * nd


def make_cnn_forward(params, input_shape):
    """Returns a jitted forward(x) running the whole network in one kernel."""
    consts, meta = _build_consts(params, input_shape)
    H, W, C = meta["H"], meta["W"], meta["C"]
    NP, n_classes = meta["NP"], meta["n_classes"]
    kernel = _make_kernel(meta["n_conv"], meta["n_dense"])

    def forward(x):
        B = x.shape[0]
        x2d = x.astype(jnp.float32).reshape(B, H, W * C)   # lanes pack (w, c)
        in_specs = [pl.BlockSpec((1, H, W * C), lambda b: (b, 0, 0))]
        for c_ in consts:
            in_specs.append(pl.BlockSpec(c_.shape, _const_map(c_.ndim)))
        out = pl.pallas_call(
            kernel,
            out_shape=jax.ShapeDtypeStruct((B, 1, NP), jnp.float32),
            grid=(B,),
            in_specs=in_specs,
            out_specs=pl.BlockSpec((1, 1, NP), lambda b: (b, 0, 0)),
            compiler_params=pltpu.CompilerParams(
                dimension_semantics=("parallel",)),
        )(x2d, *consts)
        return out[:, 0, :n_classes]

    return jax.jit(forward)


# ---------------- params init (matches the torch module layout) ----------------

def init_params(key, input_shape, n_classes, conv_out_channels, feedforward_dims,
                conv_kernel_size=3):
    H, W, C = input_shape
    params = {"conv": [], "dense": []}
    in_ch, h, w = C, H, W
    for out_ch in conv_out_channels:
        key, k1, k2 = jax.random.split(key, 3)
        fan_in = conv_kernel_size * conv_kernel_size * in_ch
        wgt = jax.random.normal(
            k1, (conv_kernel_size, conv_kernel_size, in_ch, out_ch),
            jnp.float32) / jnp.sqrt(float(fan_in))
        bias = jax.random.normal(k2, (out_ch,), jnp.float32) * 0.01
        params["conv"].append((wgt, bias))
        h, w = h - conv_kernel_size + 1, w - conv_kernel_size + 1    # conv
        h, w = (h - 2) // 2 + 1, (w - 2) // 2 + 1                    # maxpool 2,2
        in_ch = out_ch
    prev = in_ch * h * w
    for d in list(feedforward_dims) + [n_classes]:
        key, k1, k2 = jax.random.split(key, 3)
        wgt = jax.random.normal(k1, (prev, d), jnp.float32) / jnp.sqrt(float(prev))
        bias = jax.random.normal(k2, (d,), jnp.float32) * 0.01
        params["dense"].append((wgt, bias))
        prev = d
    return params


# ---------------- pure-JAX reference (sanity check) ----------------

def reference_forward(params, x):
    hp = jax.lax.Precision.HIGHEST
    h = x.astype(jnp.float32)
    for wgt, bias in params["conv"]:
        B, H, W, Cin = h.shape
        K, Cout = wgt.shape[0], wgt.shape[-1]
        Ho, Wo = H - K + 1, W - K + 1
        cols = [h[:, kh:kh + Ho, kw:kw + Wo, :] for kh in range(K) for kw in range(K)]
        patches = jnp.concatenate(cols, axis=-1).reshape(B * Ho * Wo, K * K * Cin)
        o = jnp.dot(patches, wgt.reshape(K * K * Cin, Cout), precision=hp) + bias
        h = jnp.maximum(o, 0.0).reshape(B, Ho, Wo, Cout)
        Hp, Wp = (Ho - 2) // 2 + 1, (Wo - 2) // 2 + 1
        wins = [h[:, kh:kh + 2 * Hp:2, kw:kw + 2 * Wp:2, :]
                for kh in range(2) for kw in range(2)]
        h = jnp.maximum(jnp.maximum(wins[0], wins[1]), jnp.maximum(wins[2], wins[3]))
    h = jnp.transpose(h, (0, 3, 1, 2)).reshape(h.shape[0], -1)   # NCHW flatten
    n = len(params["dense"])
    for i, (wgt, bias) in enumerate(params["dense"]):
        h = jnp.dot(h, wgt, precision=hp) + bias
        if i != n - 1:
            h = jnp.maximum(h, 0.0)
    return h


if __name__ == "__main__":
    key = jax.random.PRNGKey(0)
    key, kx, kp = jax.random.split(key, 3)

    # Module config: input_shape=(H=16, W=16, C=4), n_classes=5,
    # conv_out_channels=[8, 16], feedforward_dims=[32, 16], defaults otherwise.
    input_shape = (16, 16, 4)
    n_classes = 5
    conv_out_channels = [8, 16]
    feedforward_dims = [32, 16]
    batch = 2

    x = jax.random.normal(kx, (batch,) + input_shape, jnp.float32)
    params = init_params(kp, input_shape, n_classes, conv_out_channels,
                         feedforward_dims)

    forward = make_cnn_forward(params, input_shape)
    logits = jax.block_until_ready(forward(x))
    assert logits.shape == (batch, n_classes), logits.shape

    ref = reference_forward(params, x)
    max_diff = float(jnp.max(jnp.abs(logits - ref)))
    if not bool(jnp.allclose(logits, ref, rtol=1e-3, atol=1e-3)):
        raise AssertionError(f"mismatch vs reference, max abs diff = {max_diff}")

    print("KERNEL_OK")
</pallas_src>

<mosaic_0001>
module attributes {stable_mosaic.version = 11 : i64} {
  func.func @kernel(%arg0: i32, %arg1: memref<1x16x64xf32, #tpu.memory_space<vmem>>, %arg2: memref<3x14x16xf32, #tpu.memory_space<vmem>>, %arg3: memref<3x64x112xf32, #tpu.memory_space<vmem>>, %arg4: memref<1x112xf32, #tpu.memory_space<vmem>>, %arg5: memref<2x7x14xf32, #tpu.memory_space<vmem>>, %arg6: memref<2x112x56xf32, #tpu.memory_space<vmem>>, %arg7: memref<3x5x7xf32, #tpu.memory_space<vmem>>, %arg8: memref<3x56x80xf32, #tpu.memory_space<vmem>>, %arg9: memref<1x80xf32, #tpu.memory_space<vmem>>, %arg10: memref<2x2x5xf32, #tpu.memory_space<vmem>>, %arg11: memref<2x80x32xf32, #tpu.memory_space<vmem>>, %arg12: memref<2x32x128xf32, #tpu.memory_space<vmem>>, %arg13: memref<1x128xf32, #tpu.memory_space<vmem>>, %arg14: memref<128x128xf32, #tpu.memory_space<vmem>>, %arg15: memref<1x128xf32, #tpu.memory_space<vmem>>, %arg16: memref<128x128xf32, #tpu.memory_space<vmem>>, %arg17: memref<1x128xf32, #tpu.memory_space<vmem>>, %arg18: memref<1x1x128xf32, #tpu.memory_space<vmem>>) attributes {dimension_semantics = [#tpu.dimension_semantics<parallel>], iteration_bounds = array<i64: 2>, scalar_prefetch = 0 : i64, scratch_operands = 0 : i64, tpu.core_type = #tpu.core_type<tc>, window_params = [{transform_indices = @transform_0, window_bounds = array<i64: 1, 16, 64>}, {pipeline_mode = #tpu.pipeline_mode<synchronous>, transform_indices = @transform_1, window_bounds = array<i64: 3, 14, 16>}, {pipeline_mode = #tpu.pipeline_mode<synchronous>, transform_indices = @transform_2, window_bounds = array<i64: 3, 64, 112>}, {pipeline_mode = #tpu.pipeline_mode<synchronous>, transform_indices = @transform_3, window_bounds = array<i64: 1, 112>}, {pipeline_mode = #tpu.pipeline_mode<synchronous>, transform_indices = @transform_4, window_bounds = array<i64: 2, 7, 14>}, {pipeline_mode = #tpu.pipeline_mode<synchronous>, transform_indices = @transform_5, window_bounds = array<i64: 2, 112, 56>}, {pipeline_mode = #tpu.pipeline_mode<synchronous>, transform_indices = @transform_6, window_bounds = array<i64: 3, 5, 7>}, {pipeline_mode = #tpu.pipeline_mode<synchronous>, transform_indices = @transform_7, window_bounds = array<i64: 3, 56, 80>}, {pipeline_mode = #tpu.pipeline_mode<synchronous>, transform_indices = @transform_8, window_bounds = array<i64: 1, 80>}, {pipeline_mode = #tpu.pipeline_mode<synchronous>, transform_indices = @transform_9, window_bounds = array<i64: 2, 2, 5>}, {pipeline_mode = #tpu.pipeline_mode<synchronous>, transform_indices = @transform_10, window_bounds = array<i64: 2, 80, 32>}, {pipeline_mode = #tpu.pipeline_mode<synchronous>, transform_indices = @transform_11, window_bounds = array<i64: 2, 32, 128>}, {pipeline_mode = #tpu.pipeline_mode<synchronous>, transform_indices = @transform_12, window_bounds = array<i64: 1, 128>}, {pipeline_mode = #tpu.pipeline_mode<synchronous>, transform_indices = @transform_13, window_bounds = array<i64: 128, 128>}, {pipeline_mode = #tpu.pipeline_mode<synchronous>, transform_indices = @transform_14, window_bounds = array<i64: 1, 128>}, {pipeline_mode = #tpu.pipeline_mode<synchronous>, transform_indices = @transform_15, window_bounds = array<i64: 128, 128>}, {pipeline_mode = #tpu.pipeline_mode<synchronous>, transform_indices = @transform_16, window_bounds = array<i64: 1, 128>}, {transform_indices = @transform_17, window_bounds = array<i64: 1, 1, 128>}]} {
    %c0 = arith.constant 0 : index
    %c0_0 = arith.constant 0 : index
    %c0_1 = arith.constant 0 : index
    %0 = vector.load %arg1[%c0, %c0_0, %c0_1] : memref<1x16x64xf32, #tpu.memory_space<vmem>>, vector<1x16x64xf32>
    %1 = vector.shape_cast %0 : vector<1x16x64xf32> to vector<16x64xf32>
    %c0_2 = arith.constant 0 : index
    %c0_3 = arith.constant 0 : index
    %c0_4 = arith.constant 0 : index
    %2 = vector.load %arg2[%c0_2, %c0_3, %c0_4] : memref<3x14x16xf32, #tpu.memory_space<vmem>>, vector<1x14x16xf32>
    %3 = vector.shape_cast %2 : vector<1x14x16xf32> to vector<14x16xf32>
    %cst = arith.constant dense<0.000000e+00> : vector<14x64xf32>
    %4 = tpu.matmul %3, %1, %cst {dimension_numbers = #tpu.dot_dimension_numbers<[1], [0], [0], [1], [0, 0, 1, 1], [], []>} : vector<14x16xf32>, vector<16x64xf32>, vector<14x64xf32> -> vector<14x64xf32>
    %c0_5 = arith.constant 0 : index
    %c0_6 = arith.constant 0 : index
    %c0_7 = arith.constant 0 : index
    %5 = vector.load %arg3[%c0_5, %c0_6, %c0_7] : memref<3x64x112xf32, #tpu.memory_space<vmem>>, vector<1x64x112xf32>
    %6 = vector.shape_cast %5 : vector<1x64x112xf32> to vector<64x112xf32>
    %cst_8 = arith.constant dense<0.000000e+00> : vector<14x112xf32>
    %7 = tpu.matmul %4, %6, %cst_8 {dimension_numbers = #tpu.dot_dimension_numbers<[1], [0], [0], [1], [0, 0, 1, 1], [], []>} : vector<14x64xf32>, vector<64x112xf32>, vector<14x112xf32> -> vector<14x112xf32>
    %c1 = arith.constant 1 : index
    %c0_9 = arith.constant 0 : index
    %c0_10 = arith.constant 0 : index
    %8 = vector.load %arg2[%c1, %c0_9, %c0_10] : memref<3x14x16xf32, #tpu.memory_space<vmem>>, vector<1x14x16xf32>
    %9 = vector.shape_cast %8 : vector<1x14x16xf32> to vector<14x16xf32>
    %cst_11 = arith.constant dense<0.000000e+00> : vector<14x64xf32>
    %10 = tpu.matmul %9, %1, %cst_11 {dimension_numbers = #tpu.dot_dimension_numbers<[1], [0], [0], [1], [0, 0, 1, 1], [], []>} : vector<14x16xf32>, vector<16x64xf32>, vector<14x64xf32> -> vector<14x64xf32>
    %c1_12 = arith.constant 1 : index
    %c0_13 = arith.constant 0 : index
    %c0_14 = arith.constant 0 : index
    %11 = vector.load %arg3[%c1_12, %c0_13, %c0_14] : memref<3x64x112xf32, #tpu.memory_space<vmem>>, vector<1x64x112xf32>
    %12 = vector.shape_cast %11 : vector<1x64x112xf32> to vector<64x112xf32>
    %cst_15 = arith.constant dense<0.000000e+00> : vector<14x112xf32>
    %13 = tpu.matmul %10, %12, %cst_15 {dimension_numbers = #tpu.dot_dimension_numbers<[1], [0], [0], [1], [0, 0, 1, 1], [], []>} : vector<14x64xf32>, vector<64x112xf32>, vector<14x112xf32> -> vector<14x112xf32>
    %14 = arith.addf %7, %13 : vector<14x112xf32>
    %c2 = arith.constant 2 : index
    %c0_16 = arith.constant 0 : index
    %c0_17 = arith.constant 0 : index
    %15 = vector.load %arg2[%c2, %c0_16, %c0_17] : memref<3x14x16xf32, #tpu.memory_space<vmem>>, vector<1x14x16xf32>
    %16 = vector.shape_cast %15 : vector<1x14x16xf32> to vector<14x16xf32>
    %cst_18 = arith.constant dense<0.000000e+00> : vector<14x64xf32>
    %17 = tpu.matmul %16, %1, %cst_18 {dimension_numbers = #tpu.dot_dimension_numbers<[1], [0], [0], [1], [0, 0, 1, 1], [], []>} : vector<14x16xf32>, vector<16x64xf32>, vector<14x64xf32> -> vector<14x64xf32>
    %c2_19 = arith.constant 2 : index
    %c0_20 = arith.constant 0 : index
    %c0_21 = arith.constant 0 : index
    %18 = vector.load %arg3[%c2_19, %c0_20, %c0_21] : memref<3x64x112xf32, #tpu.memory_space<vmem>>, vector<1x64x112xf32>
    %19 = vector.shape_cast %18 : vector<1x64x112xf32> to vector<64x112xf32>
    %cst_22 = arith.constant dense<0.000000e+00> : vector<14x112xf32>
    %20 = tpu.matmul %17, %19, %cst_22 {dimension_numbers = #tpu.dot_dimension_numbers<[1], [0], [0], [1], [0, 0, 1, 1], [], []>} : vector<14x64xf32>, vector<64x112xf32>, vector<14x112xf32> -> vector<14x112xf32>
    %21 = arith.addf %14, %20 : vector<14x112xf32>
    %c0_23 = arith.constant 0 : index
    %c0_24 = arith.constant 0 : index
    %22 = vector.load %arg4[%c0_23, %c0_24] : memref<1x112xf32, #tpu.memory_space<vmem>>, vector<1x112xf32>
    %23 = vector.broadcast %22 : vector<1x112xf32> to vector<14x112xf32>
    %24 = arith.addf %21, %23 : vector<14x112xf32>
    %cst_25 = arith.constant 0.000000e+00 : f32
    %25 = vector.broadcast %cst_25 : f32 to vector<14x112xf32>
    %26 = arith.maximumf %24, %25 : vector<14x112xf32>
    %c0_26 = arith.constant 0 : index
    %c0_27 = arith.constant 0 : index
    %c0_28 = arith.constant 0 : index
    %27 = vector.load %arg5[%c0_26, %c0_27, %c0_28] : memref<2x7x14xf32, #tpu.memory_space<vmem>>, vector<1x7x14xf32>
    %28 = vector.shape_cast %27 : vector<1x7x14xf32> to vector<7x14xf32>
    %cst_29 = arith.constant dense<0.000000e+00> : vector<7x112xf32>
    %29 = tpu.matmul %28, %26, %cst_29 {dimension_numbers = #tpu.dot_dimension_numbers<[1], [0], [0], [1], [0, 0, 1, 1], [], []>} : vector<7x14xf32>, vector<14x112xf32>, vector<7x112xf32> -> vector<7x112xf32>
    %c1_30 = arith.constant 1 : index
    %c0_31 = arith.constant 0 : index
    %c0_32 = arith.constant 0 : index
    %30 = vector.load %arg5[%c1_30, %c0_31, %c0_32] : memref<2x7x14xf32, #tpu.memory_space<vmem>>, vector<1x7x14xf32>
    %31 = vector.shape_cast %30 : vector<1x7x14xf32> to vector<7x14xf32>
    %cst_33 = arith.constant dense<0.000000e+00> : vector<7x112xf32>
    %32 = tpu.matmul %31, %26, %cst_33 {dimension_numbers = #tpu.dot_dimension_numbers<[1], [0], [0], [1], [0, 0, 1, 1], [], []>} : vector<7x14xf32>, vector<14x112xf32>, vector<7x112xf32> -> vector<7x112xf32>
    %33 = arith.maximumf %29, %32 : vector<7x112xf32>
    %c0_34 = arith.constant 0 : index
    %c0_35 = arith.constant 0 : index
    %c0_36 = arith.constant 0 : index
    %34 = vector.load %arg6[%c0_34, %c0_35, %c0_36] : memref<2x112x56xf32, #tpu.memory_space<vmem>>, vector<1x112x56xf32>
    %35 = vector.shape_cast %34 : vector<1x112x56xf32> to vector<112x56xf32>
    %cst_37 = arith.constant dense<0.000000e+00> : vector<7x56xf32>
    %36 = tpu.matmul %33, %35, %cst_37 {dimension_numbers = #tpu.dot_dimension_numbers<[1], [0], [0], [1], [0, 0, 1, 1], [], []>} : vector<7x112xf32>, vector<112x56xf32>, vector<7x56xf32> -> vector<7x56xf32>
    %c1_38 = arith.constant 1 : index
    %c0_39 = arith.constant 0 : index
    %c0_40 = arith.constant 0 : index
    %37 = vector.load %arg6[%c1_38, %c0_39, %c0_40] : memref<2x112x56xf32, #tpu.memory_space<vmem>>, vector<1x112x56xf32>
    %38 = vector.shape_cast %37 : vector<1x112x56xf32> to vector<112x56xf32>
    %cst_41 = arith.constant dense<0.000000e+00> : vector<7x56xf32>
    %39 = tpu.matmul %33, %38, %cst_41 {dimension_numbers = #tpu.dot_dimension_numbers<[1], [0], [0], [1], [0, 0, 1, 1], [], []>} : vector<7x112xf32>, vector<112x56xf32>, vector<7x56xf32> -> vector<7x56xf32>
    %40 = arith.maximumf %36, %39 : vector<7x56xf32>
    %c0_42 = arith.constant 0 : index
    %c0_43 = arith.constant 0 : index
    %c0_44 = arith.constant 0 : index
    %41 = vector.load %arg7[%c0_42, %c0_43, %c0_44] : memref<3x5x7xf32, #tpu.memory_space<vmem>>, vector<1x5x7xf32>
    %42 = vector.shape_cast %41 : vector<1x5x7xf32> to vector<5x7xf32>
    %cst_45 = arith.constant dense<0.000000e+00> : vector<5x56xf32>
    %43 = tpu.matmul %42, %40, %cst_45 {dimension_numbers = #tpu.dot_dimension_numbers<[1], [0], [0], [1], [0, 0, 1, 1], [], []>} : vector<5x7xf32>, vector<7x56xf32>, vector<5x56xf32> -> vector<5x56xf32>
    %c0_46 = arith.constant 0 : index
    %c0_47 = arith.constant 0 : index
    %c0_48 = arith.constant 0 : index
    %44 = vector.load %arg8[%c0_46, %c0_47, %c0_48] : memref<3x56x80xf32, #tpu.memory_space<vmem>>, vector<1x56x80xf32>
    %45 = vector.shape_cast %44 : vector<1x56x80xf32> to vector<56x80xf32>
    %cst_49 = arith.constant dense<0.000000e+00> : vector<5x80xf32>
    %46 = tpu.matmul %43, %45, %cst_49 {dimension_numbers = #tpu.dot_dimension_numbers<[1], [0], [0], [1], [0, 0, 1, 1], [], []>} : vector<5x56xf32>, vector<56x80xf32>, vector<5x80xf32> -> vector<5x80xf32>
    %c1_50 = arith.constant 1 : index
    %c0_51 = arith.constant 0 : index
    %c0_52 = arith.constant 0 : index
    %47 = vector.load %arg7[%c1_50, %c0_51, %c0_52] : memref<3x5x7xf32, #tpu.memory_space<vmem>>, vector<1x5x7xf32>
    %48 = vector.shape_cast %47 : vector<1x5x7xf32> to vector<5x7xf32>
    %cst_53 = arith.constant dense<0.000000e+00> : vector<5x56xf32>
    %49 = tpu.matmul %48, %40, %cst_53 {dimension_numbers = #tpu.dot_dimension_numbers<[1], [0], [0], [1], [0, 0, 1, 1], [], []>} : vector<5x7xf32>, vector<7x56xf32>, vector<5x56xf32> -> vector<5x56xf32>
    %c1_54 = arith.constant 1 : index
    %c0_55 = arith.constant 0 : index
    %c0_56 = arith.constant 0 : index
    %50 = vector.load %arg8[%c1_54, %c0_55, %c0_56] : memref<3x56x80xf32, #tpu.memory_space<vmem>>, vector<1x56x80xf32>
    %51 = vector.shape_cast %50 : vector<1x56x80xf32> to vector<56x80xf32>
    %cst_57 = arith.constant dense<0.000000e+00> : vector<5x80xf32>
    %52 = tpu.matmul %49, %51, %cst_57 {dimension_numbers = #tpu.dot_dimension_numbers<[1], [0], [0], [1], [0, 0, 1, 1], [], []>} : vector<5x56xf32>, vector<56x80xf32>, vector<5x80xf32> -> vector<5x80xf32>
    %53 = arith.addf %46, %52 : vector<5x80xf32>
    %c2_58 = arith.constant 2 : index
    %c0_59 = arith.constant 0 : index
    %c0_60 = arith.constant 0 : index
    %54 = vector.load %arg7[%c2_58, %c0_59, %c0_60] : memref<3x5x7xf32, #tpu.memory_space<vmem>>, vector<1x5x7xf32>
    %55 = vector.shape_cast %54 : vector<1x5x7xf32> to vector<5x7xf32>
    %cst_61 = arith.constant dense<0.000000e+00> : vector<5x56xf32>
    %56 = tpu.matmul %55, %40, %cst_61 {dimension_numbers = #tpu.dot_dimension_numbers<[1], [0], [0], [1], [0, 0, 1, 1], [], []>} : vector<5x7xf32>, vector<7x56xf32>, vector<5x56xf32> -> vector<5x56xf32>
    %c2_62 = arith.constant 2 : index
    %c0_63 = arith.constant 0 : index
    %c0_64 = arith.constant 0 : index
    %57 = vector.load %arg8[%c2_62, %c0_63, %c0_64] : memref<3x56x80xf32, #tpu.memory_space<vmem>>, vector<1x56x80xf32>
    %58 = vector.shape_cast %57 : vector<1x56x80xf32> to vector<56x80xf32>
    %cst_65 = arith.constant dense<0.000000e+00> : vector<5x80xf32>
    %59 = tpu.matmul %56, %58, %cst_65 {dimension_numbers = #tpu.dot_dimension_numbers<[1], [0], [0], [1], [0, 0, 1, 1], [], []>} : vector<5x56xf32>, vector<56x80xf32>, vector<5x80xf32> -> vector<5x80xf32>
    %60 = arith.addf %53, %59 : vector<5x80xf32>
    %c0_66 = arith.constant 0 : index
    %c0_67 = arith.constant 0 : index
    %61 = vector.load %arg9[%c0_66, %c0_67] : memref<1x80xf32, #tpu.memory_space<vmem>>, vector<1x80xf32>
    %62 = vector.broadcast %61 : vector<1x80xf32> to vector<5x80xf32>
    %63 = arith.addf %60, %62 : vector<5x80xf32>
    %cst_68 = arith.constant 0.000000e+00 : f32
    %64 = vector.broadcast %cst_68 : f32 to vector<5x80xf32>
    %65 = arith.maximumf %63, %64 : vector<5x80xf32>
    %c0_69 = arith.constant 0 : index
    %c0_70 = arith.constant 0 : index
    %c0_71 = arith.constant 0 : index
    %66 = vector.load %arg10[%c0_69, %c0_70, %c0_71] : memref<2x2x5xf32, #tpu.memory_space<vmem>>, vector<1x2x5xf32>
    %67 = vector.shape_cast %66 : vector<1x2x5xf32> to vector<2x5xf32>
    %cst_72 = arith.constant dense<0.000000e+00> : vector<2x80xf32>
    %68 = tpu.matmul %67, %65, %cst_72 {dimension_numbers = #tpu.dot_dimension_numbers<[1], [0], [0], [1], [0, 0, 1, 1], [], []>} : vector<2x5xf32>, vector<5x80xf32>, vector<2x80xf32> -> vector<2x80xf32>
    %c1_73 = arith.constant 1 : index
    %c0_74 = arith.constant 0 : index
    %c0_75 = arith.constant 0 : index
    %69 = vector.load %arg10[%c1_73, %c0_74, %c0_75] : memref<2x2x5xf32, #tpu.memory_space<vmem>>, vector<1x2x5xf32>
    %70 = vector.shape_cast %69 : vector<1x2x5xf32> to vector<2x5xf32>
    %cst_76 = arith.constant dense<0.000000e+00> : vector<2x80xf32>
    %71 = tpu.matmul %70, %65, %cst_76 {dimension_numbers = #tpu.dot_dimension_numbers<[1], [0], [0], [1], [0, 0, 1, 1], [], []>} : vector<2x5xf32>, vector<5x80xf32>, vector<2x80xf32> -> vector<2x80xf32>
    %72 = arith.maximumf %68, %71 : vector<2x80xf32>
    %c0_77 = arith.constant 0 : index
    %c0_78 = arith.constant 0 : index
    %c0_79 = arith.constant 0 : index
    %73 = vector.load %arg11[%c0_77, %c0_78, %c0_79] : memref<2x80x32xf32, #tpu.memory_space<vmem>>, vector<1x80x32xf32>
    %74 = vector.shape_cast %73 : vector<1x80x32xf32> to vector<80x32xf32>
    %cst_80 = arith.constant dense<0.000000e+00> : vector<2x32xf32>
    %75 = tpu.matmul %72, %74, %cst_80 {dimension_numbers = #tpu.dot_dimension_numbers<[1], [0], [0], [1], [0, 0, 1, 1], [], []>} : vector<2x80xf32>, vector<80x32xf32>, vector<2x32xf32> -> vector<2x32xf32>
    %c1_81 = arith.constant 1 : index
    %c0_82 = arith.constant 0 : index
    %c0_83 = arith.constant 0 : index
    %76 = vector.load %arg11[%c1_81, %c0_82, %c0_83] : memref<2x80x32xf32, #tpu.memory_space<vmem>>, vector<1x80x32xf32>
    %77 = vector.shape_cast %76 : vector<1x80x32xf32> to vector<80x32xf32>
    %cst_84 = arith.constant dense<0.000000e+00> : vector<2x32xf32>
    %78 = tpu.matmul %72, %77, %cst_84 {dimension_numbers = #tpu.dot_dimension_numbers<[1], [0], [0], [1], [0, 0, 1, 1], [], []>} : vector<2x80xf32>, vector<80x32xf32>, vector<2x32xf32> -> vector<2x32xf32>
    %79 = arith.maximumf %75, %78 : vector<2x32xf32>
    %80 = vector.extract_strided_slice %79 {offsets = [0, 0], sizes = [1, 32], strides = [1, 1]} : vector<2x32xf32> to vector<1x32xf32>
    %c0_85 = arith.constant 0 : index
    %c0_86 = arith.constant 0 : index
    %c0_87 = arith.constant 0 : index
    %81 = vector.load %arg12[%c0_85, %c0_86, %c0_87] : memref<2x32x128xf32, #tpu.memory_space<vmem>>, vector<1x32x128xf32>
    %82 = vector.shape_cast %81 : vector<1x32x128xf32> to vector<32x128xf32>
    %cst_88 = arith.constant dense<0.000000e+00> : vector<1x128xf32>
    %83 = tpu.matmul %80, %82, %cst_88 {dimension_numbers = #tpu.dot_dimension_numbers<[1], [0], [0], [1], [0, 0, 1, 1], [], []>} : vector<1x32xf32>, vector<32x128xf32>, vector<1x128xf32> -> vector<1x128xf32>
    %84 = vector.extract_strided_slice %79 {offsets = [1, 0], sizes = [1, 32], strides = [1, 1]} : vector<2x32xf32> to vector<1x32xf32>
    %c1_89 = arith.constant 1 : index
    %c0_90 = arith.constant 0 : index
    %c0_91 = arith.constant 0 : index
    %85 = vector.load %arg12[%c1_89, %c0_90, %c0_91] : memref<2x32x128xf32, #tpu.memory_space<vmem>>, vector<1x32x128xf32>
    %86 = vector.shape_cast %85 : vector<1x32x128xf32> to vector<32x128xf32>
    %cst_92 = arith.constant dense<0.000000e+00> : vector<1x128xf32>
    %87 = tpu.matmul %84, %86, %cst_92 {dimension_numbers = #tpu.dot_dimension_numbers<[1], [0], [0], [1], [0, 0, 1, 1], [], []>} : vector<1x32xf32>, vector<32x128xf32>, vector<1x128xf32> -> vector<1x128xf32>
    %88 = arith.addf %83, %87 : vector<1x128xf32>
    %c0_93 = arith.constant 0 : index
    %c0_94 = arith.constant 0 : index
    %89 = vector.load %arg13[%c0_93, %c0_94] : memref<1x128xf32, #tpu.memory_space<vmem>>, vector<1x128xf32>
    %90 = arith.addf %88, %89 : vector<1x128xf32>
    %cst_95 = arith.constant 0.000000e+00 : f32
    %91 = vector.broadcast %cst_95 : f32 to vector<1x128xf32>
    %92 = arith.maximumf %90, %91 : vector<1x128xf32>
    %c0_96 = arith.constant 0 : index
    %c0_97 = arith.constant 0 : index
    %93 = vector.load %arg14[%c0_96, %c0_97] : memref<128x128xf32, #tpu.memory_space<vmem>>, vector<128x128xf32>
    %cst_98 = arith.constant dense<0.000000e+00> : vector<1x128xf32>
    %94 = tpu.matmul %92, %93, %cst_98 {dimension_numbers = #tpu.dot_dimension_numbers<[1], [0], [0], [1], [0, 0, 1, 1], [], []>} : vector<1x128xf32>, vector<128x128xf32>, vector<1x128xf32> -> vector<1x128xf32>
    %c0_99 = arith.constant 0 : index
    %c0_100 = arith.constant 0 : index
    %95 = vector.load %arg15[%c0_99, %c0_100] : memref<1x128xf32, #tpu.memory_space<vmem>>, vector<1x128xf32>
    %96 = arith.addf %94, %95 : vector<1x128xf32>
    %cst_101 = arith.constant 0.000000e+00 : f32
    %97 = vector.broadcast %cst_101 : f32 to vector<1x128xf32>
    %98 = arith.maximumf %96, %97 : vector<1x128xf32>
    %c0_102 = arith.constant 0 : index
    %c0_103 = arith.constant 0 : index
    %99 = vector.load %arg16[%c0_102, %c0_103] : memref<128x128xf32, #tpu.memory_space<vmem>>, vector<128x128xf32>
    %cst_104 = arith.constant dense<0.000000e+00> : vector<1x128xf32>
    %100 = tpu.matmul %98, %99, %cst_104 {dimension_numbers = #tpu.dot_dimension_numbers<[1], [0], [0], [1], [0, 0, 1, 1], [], []>} : vector<1x128xf32>, vector<128x128xf32>, vector<1x128xf32> -> vector<1x128xf32>
    %c0_105 = arith.constant 0 : index
    %c0_106 = arith.constant 0 : index
    %101 = vector.load %arg17[%c0_105, %c0_106] : memref<1x128xf32, #tpu.memory_space<vmem>>, vector<1x128xf32>
    %102 = arith.addf %100, %101 : vector<1x128xf32>
    %c0_107 = arith.constant 0 : index
    %c0_108 = arith.constant 0 : index
    %c0_109 = arith.constant 0 : index
    %103 = vector.load %arg18[%c0_107, %c0_108, %c0_109] : memref<1x1x128xf32, #tpu.memory_space<vmem>>, vector<1x1x128xf32>
    %104 = vector.shape_cast %103 : vector<1x1x128xf32> to vector<1x128xf32>
    %105 = vector.shape_cast %102 : vector<1x128xf32> to vector<1x1x128xf32>
    tpu.vector_store %arg18[%c0_107, %c0_108, %c0_109], %105 {strides = array<i32>} : memref<1x1x128xf32, #tpu.memory_space<vmem>>, vector<1x1x128xf32>,
    return
  }
  func.func @transform_0(%arg0: i32) -> (i32, i32, i32) {
    %c0_i32 = arith.constant 0 : i32
    %c0_i32_0 = arith.constant 0 : i32
    %c0_i32_1 = arith.constant 0 : i32
    return %arg0, %c0_i32, %c0_i32_0 : i32, i32, i32
  }
  func.func @transform_1(%arg0: i32) -> (i32, i32, i32) {
    %c0_i32 = arith.constant 0 : i32
    %c0_i32_0 = arith.constant 0 : i32
    %c0_i32_1 = arith.constant 0 : i32
    %c0_i32_2 = arith.constant 0 : i32
    return %c0_i32, %c0_i32_0, %c0_i32_1 : i32, i32, i32
  }
  func.func @transform_2(%arg0: i32) -> (i32, i32, i32) {
    %c0_i32 = arith.constant 0 : i32
    %c0_i32_0 = arith.constant 0 : i32
    %c0_i32_1 = arith.constant 0 : i32
    %c0_i32_2 = arith.constant 0 : i32
    return %c0_i32, %c0_i32_0, %c0_i32_1 : i32, i32, i32
  }
  func.func @transform_3(%arg0: i32) -> (i32, i32) {
    %c0_i32 = arith.constant 0 : i32
    %c0_i32_0 = arith.constant 0 : i32
    %c0_i32_1 = arith.constant 0 : i32
    return %c0_i32, %c0_i32_0 : i32, i32
  }
  func.func @transform_4(%arg0: i32) -> (i32, i32, i32) {
    %c0_i32 = arith.constant 0 : i32
    %c0_i32_0 = arith.constant 0 : i32
    %c0_i32_1 = arith.constant 0 : i32
    %c0_i32_2 = arith.constant 0 : i32
    return %c0_i32, %c0_i32_0, %c0_i32_1 : i32, i32, i32
  }
  func.func @transform_5(%arg0: i32) -> (i32, i32, i32) {
    %c0_i32 = arith.constant 0 : i32
    %c0_i32_0 = arith.constant 0 : i32
    %c0_i32_1 = arith.constant 0 : i32
    %c0_i32_2 = arith.constant 0 : i32
    return %c0_i32, %c0_i32_0, %c0_i32_1 : i32, i32, i32
  }
  func.func @transform_6(%arg0: i32) -> (i32, i32, i32) {
    %c0_i32 = arith.constant 0 : i32
    %c0_i32_0 = arith.constant 0 : i32
    %c0_i32_1 = arith.constant 0 : i32
    %c0_i32_2 = arith.constant 0 : i32
    return %c0_i32, %c0_i32_0, %c0_i32_1 : i32, i32, i32
  }
  func.func @transform_7(%arg0: i32) -> (i32, i32, i32) {
    %c0_i32 = arith.constant 0 : i32
    %c0_i32_0 = arith.constant 0 : i32
    %c0_i32_1 = arith.constant 0 : i32
    %c0_i32_2 = arith.constant 0 : i32
    return %c0_i32, %c0_i32_0, %c0_i32_1 : i32, i32, i32
  }
  func.func @transform_8(%arg0: i32) -> (i32, i32) {
    %c0_i32 = arith.constant 0 : i32
    %c0_i32_0 = arith.constant 0 : i32
    %c0_i32_1 = arith.constant 0 : i32
    return %c0_i32, %c0_i32_0 : i32, i32
  }
  func.func @transform_9(%arg0: i32) -> (i32, i32, i32) {
    %c0_i32 = arith.constant 0 : i32
    %c0_i32_0 = arith.constant 0 : i32
    %c0_i32_1 = arith.constant 0 : i32
    %c0_i32_2 = arith.constant 0 : i32
    return %c0_i32, %c0_i32_0, %c0_i32_1 : i32, i32, i32
  }
  func.func @transform_10(%arg0: i32) -> (i32, i32, i32) {
    %c0_i32 = arith.constant 0 : i32
    %c0_i32_0 = arith.constant 0 : i32
    %c0_i32_1 = arith.constant 0 : i32
    %c0_i32_2 = arith.constant 0 : i32
    return %c0_i32, %c0_i32_0, %c0_i32_1 : i32, i32, i32
  }
  func.func @transform_11(%arg0: i32) -> (i32, i32, i32) {
    %c0_i32 = arith.constant 0 : i32
    %c0_i32_0 = arith.constant 0 : i32
    %c0_i32_1 = arith.constant 0 : i32
    %c0_i32_2 = arith.constant 0 : i32
    return %c0_i32, %c0_i32_0, %c0_i32_1 : i32, i32, i32
  }
  func.func @transform_12(%arg0: i32) -> (i32, i32) {
    %c0_i32 = arith.constant 0 : i32
    %c0_i32_0 = arith.constant 0 : i32
    %c0_i32_1 = arith.constant 0 : i32
    return %c0_i32, %c0_i32_0 : i32, i32
  }
  func.func @transform_13(%arg0: i32) -> (i32, i32) {
    %c0_i32 = arith.constant 0 : i32
    %c0_i32_0 = arith.constant 0 : i32
    %c0_i32_1 = arith.constant 0 : i32
    return %c0_i32, %c0_i32_0 : i32, i32
  }
  func.func @transform_14(%arg0: i32) -> (i32, i32) {
    %c0_i32 = arith.constant 0 : i32
    %c0_i32_0 = arith.constant 0 : i32
    %c0_i32_1 = arith.constant 0 : i32
    return %c0_i32, %c0_i32_0 : i32, i32
  }
  func.func @transform_15(%arg0: i32) -> (i32, i32) {
    %c0_i32 = arith.constant 0 : i32
    %c0_i32_0 = arith.constant 0 : i32
    %c0_i32_1 = arith.constant 0 : i32
    return %c0_i32, %c0_i32_0 : i32, i32
  }
  func.func @transform_16(%arg0: i32) -> (i32, i32) {
    %c0_i32 = arith.constant 0 : i32
    %c0_i32_0 = arith.constant 0 : i32
    %c0_i32_1 = arith.constant 0 : i32
    return %c0_i32, %c0_i32_0 : i32, i32
  }
  func.func @transform_17(%arg0: i32) -> (i32, i32, i32) {
    %c0_i32 = arith.constant 0 : i32
    %c0_i32_0 = arith.constant 0 : i32
    %c0_i32_1 = arith.constant 0 : i32
    return %arg0, %c0_i32, %c0_i32_0 : i32, i32, i32
  }
}

</mosaic_0001>

<bundles_post_ra>
// kernel: forward.1
= control target key start
LH: loop header
LB: loop body
LE: loop exit
PB: predicated region body
PF: predicated region fallthrough
CT: control target
= control target key end

     0   :  { %s4845_s0 = inlined_call_operand.vmem [shape: f32[2,16,64], index: 0, kind: input, shape index: {}]   ;;  %s4846_s1 = inlined_call_operand.hbm [shape: f32[3,14,16], index: 1, kind: input, shape index: {}]   ;;  %s4847_s2 = inlined_call_operand.vmem [shape: f32[3,64,112], index: 2, kind: input, shape index: {}]   ;;  %s4848_s3 = inlined_call_operand.hbm [shape: f32[1,112], index: 3, kind: input, shape index: {}]   ;;  %s4849_s4 = inlined_call_operand.hbm [shape: f32[2,7,14], index: 4, kind: input, shape index: {}]   ;;  %s4850_s5 = inlined_call_operand.vmem [shape: f32[2,112,56], index: 5, kind: input, shape index: {}]   ;;  %s4851_s6 = inlined_call_operand.vmem [shape: f32[3,5,7], index: 6, kind: input, shape index: {}]   ;;  %s4852_s7 = inlined_call_operand.hbm [shape: f32[3,56,80], index: 7, kind: input, shape index: {}]   ;;  %s4853_s8 = inlined_call_operand.vmem [shape: f32[1,80], index: 8, kind: input, shape index: {}]   ;;  %s4854_s9 = inlined_call_operand.vmem [shape: f32[2,2,5], index: 9, kind: input, shape index: {}]   ;;  %s4855_s10 = inlined_call_operand.hbm [shape: f32[2,80,32], index: 10, kind: input, shape index: {}]   ;;  %s4856_s11 = inlined_call_operand.hbm [shape: f32[2,32,128], index: 11, kind: input, shape index: {}]   ;;  %s4857_s12 = inlined_call_operand.vmem [shape: f32[1,128], index: 12, kind: input, shape index: {}]   ;;  %s4858_s13 = inlined_call_operand.hbm [shape: f32[128,128], index: 13, kind: input, shape index: {}]   ;;  %s4859_s14 = inlined_call_operand.vmem [shape: f32[1,128], index: 14, kind: input, shape index: {}]   ;;  %s4860_s15 = inlined_call_operand.hbm [shape: f32[128,128], index: 15, kind: input, shape index: {}]   ;;  %s4861_s16 = inlined_call_operand.vmem [shape: f32[1,128], index: 16, kind: input, shape index: {}]   ;;  %s4862_s17 = inlined_call_operand.hbm [shape: f32[2,1,128], index: 17, kind: output, shape index: {}]  }
   0x1   :  { %4877 = sst [smem:[#allocation31_spill]] %s4845_s0 }
   0x2   :  { %4878 = sst [smem:[#allocation32_spill]] %s4846_s1 }
   0x3   :  { %4879 = sst [smem:[#allocation33_spill]] %s4848_s3 }
   0x4   :  { %4880 = sst [smem:[#allocation34_spill]] %s4852_s7 }
   0x5   :  { %4881 = sst [smem:[#allocation35_spill]] %s4859_s14 }
   0x6   :  { %4882 = sst [smem:[#allocation36_spill]] %s4861_s16 }
   0x7   :  { %4883 = sst [smem:[#allocation37_spill]] %s4862_s17 }
   0x8   :  { %22 = vsyncpa [#allocation3], 0 }
   0x9   :  { %23 = vsyncpa [#allocation6], 0 }
   0xa   :  { %24 = vsyncpa [#allocation9], 0 }
   0xb   :  { %25 = vsyncpa [#allocation12], 0 }
   0xc   :  { %26 = vsyncpa [#allocation15], 0 }
   0xd   :  { %27 = vsyncpa [#allocation4], 0 }
   0xe   :  { %29 = vsyncpa [#allocation4 + $0x1], 0  ;;  %s4224_s24 = smov 0   ;;  %s4226_s25 = smov 0  }
   0xf   :  { %s4228_s26 = smov 0   ;;  %s4230_s27 = smov 0  }
  0x10 LB: > { %4884 = sst [smem:[#allocation23_spill]] %s4105_s24  ;;  %s4245_s28 = sadd.s32 4294967295, %s4117_s27   ;;  %s4117_s27 = sphi %s4230_s27, %s4923_s27   ;;  %s4113_s26 = sphi %s4228_s26, %s4926_s26   ;;  %s4109_s25 = sphi %s4226_s25, %s4925_s25   ;;  %s4105_s24 = sphi %s4224_s24, %s4924_s24  }
  0x11   : > { %4885 = sst [smem:[#allocation24_spill]] %s4109_s25  ;;  %s2812_s29 = sadd.s32 4294967294, %s4117_s27  }
  0x12   : > { %4886 = sst [smem:[#allocation25_spill]] %s4113_s26  ;;  %s4249_s0 = sadd.s32 1, %s4117_s27  }
  0x13   : > { %4887 = sst [smem:[#allocation26_spill]] %s4117_s27  ;;  %s404_s30 = sadd.s32 1, %s4113_s26 }
  0x14   : > { %4888 = sst [smem:[#allocation27_spill]] %s4249_s0  ;;  %s401_s18 = ssub.s32 %s4117_s27, %s4249_s0 }
  0x15   : > { %p414_p0 = scmp.ne.s32.totalorder %s4113_s26, %s4109_s25  ;;  %p402_p1 = scmp.eq.s32.totalorder %s401_s18, 0 }
  0x16   : > { %p415_p2 = scmp.eq.s32.totalorder %s4245_s28, 1  ;;  %p420_p3 = scmp.ne.s32.totalorder %s4109_s25, %s4105_s24 }
  0x17   : > { %p421_p4 = scmp.eq.s32.totalorder %s2812_s29, 1  ;;  %p2813_p7 = scmp.ge.s32.totalorder %s4117_s27, 1 }
  0x18   : > { %s4260_s19 = scalar_select %p402_p1, %s4113_s26, %s404_s30  }
  0x19   : > { %p4262_p5 = por %p415_p2, %p414_p0  ;;  %p4266_p6 = por %p421_p4, %p420_p3 }
  0x1a   : > { %4889 = sst [smem:[#allocation28_spill]] %s4260_s19  ;;  %p428_p8 = scmp.lt.s32.totalorder %s4117_s27, 3 }
  0x1b   : > { %s4890_s1 = scalar_select %p4262_p5, 1, 0 }
  0x1c   : > { %s4892_s20 = scalar_select %p4266_p6, 1, 0 }
  0x1d   : > { %4891 = sst [smem:[#allocation29_spill]] %s4890_s1  ;;  %p4871_p9 = scmp.eq.s32.totalorder %s4245_s28, 0 }
  0x1e   : > { %4893 = sst [smem:[#allocation30_spill]] %s4892_s20  ;;  %p4273_p10 = pnand %p2813_p7, %p428_p8 }
  0x1f   : > { %s4119_s22 = smov [#allocation5]   ;;  %s4120_s30 = smov [#allocation8]  }
  0x20   : > { %s4894_s21 = scalar_select %p4273_p10, 1, 0 }
  0x21   : > { %s457_s23 = sshll.u32 %s4119_s22, 4  ;;  %p3719_p11 = pneg %p4273_p10  ;;  %s458_s23 = int_to_ptr.vmem [resolvable:$true] %s457_s23 }
  0x22   : > { %s486_s18 = sshll.u32 %s4120_s30, 4  ;;  %s4121_s19 = smov [#allocation11]   ;;  %s4285_s18 = int_to_ptr.vmem [resolvable:$true] %s486_s18 }
  0x23   : > { %p4281_p12 = pnand %p4871_p9, %p3719_p11  ;;  %s4287_s26 = sshll.u32 %s4121_s19, 4  ;;  %s519_s26 = int_to_ptr.vmem [resolvable:$true] %s4287_s26 }
  0x24   : > { %s4896_s3 = sld [smem:[#allocation33_spill]] }
  0x25   : > { %p4297_p0 = pneg %p4281_p12 }
  0x2a   : > { %s3811_s22 = scalar_lea.hbm %s4896_s3, 16 }
  0x2b   : > { %p3812_p13 = scmp.ne.s32.totalorder %s4896_s3, %s3811_s22  ;;  %p3818_p3 = scmp.lt.u32.totalorder %s3811_s22, %s4896_s3 }
  0x2d   : > { %p3814_p1 = pnand %p4297_p0, %p3812_p13 }
  0x2f   : > { %p3815_p2 = pneg %p3814_p1 }
  0x31   : > { %p3820_p4 = pnand %p3818_p3, %p3815_p2 }
  0x33   : > { %3823 = shalt.err (!%p3820_p4)
}
  0x34   : > { %s3824_s0 = scalar_lea.vmem %s458_s23, 16  ;;  %s3831_s24 = scalar_lea.vmem %s458_s23, 32 }
  0x35   : > { %p3825_p7 = scmp.ne.s32.totalorder %s458_s23, %s3824_s0  ;;  %p3832_p9 = scmp.lt.s32.totalorder %s458_s23, %s458_s23 }
  0x36   : > { %p3833_p6 = scmp.lt.s32.totalorder %s3831_s24, %s3824_s0 }
  0x37   : > { %p3827_p8 = pnand %p3825_p7, %p4297_p0 }
  0x38   : > { %p3834_p5 = por %p3833_p6, %p3832_p9 }
  0x39   : > { %p3828_p11 = pneg %p3827_p8 }
  0x3b   : > { %p3835_p10 = pnand %p3834_p5, %p3828_p11 }
  0x3d   : > { %3838 = shalt.err (!%p3835_p10)
}
  0x3e   : > { %3725 = dma.hbm_to_vmem [thread:$0]  (!%p4281_p12), %s4896_s3, 16, %s458_s23, [#allocation6]  }
  0x3f   : > { %s4898_s7 = sld [smem:[#allocation34_spill]] }
  0x45   : > { %s3839_s19 = scalar_lea.hbm %s4898_s7, 2688 }
  0x46   : > { %p3840_p13 = scmp.ne.s32.totalorder %s4898_s7, %s3839_s19  ;;  %p3846_p5 = scmp.lt.u32.totalorder %s3839_s19, %s4898_s7 }
  0x48   : > { %p3842_p1 = pnand %p3840_p13, %p4297_p0 }
  0x4a   : > { %p3843_p6 = pneg %p3842_p1 }
  0x4c   : > { %p3848_p9 = pnand %p3846_p5, %p3843_p6 }
  0x4e   : > { %3851 = shalt.err (!%p3848_p9)
}
  0x4f   : > { %s3852_s23 = scalar_lea.vmem %s4285_s18, 2688  ;;  %p3860_p4 = scmp.lt.s32.totalorder %s4285_s18, %s4285_s18 }
  0x50   : > { %p3853_p10 = scmp.ne.s32.totalorder %s4285_s18, %s3852_s23  ;;  %p3861_p7 = scmp.lt.s32.totalorder %s3852_s23, %s3852_s23 }
  0x52   : > { %p3855_p2 = pnand %p3853_p10, %p4297_p0  ;;  %p3862_p8 = por %p3861_p7, %p3860_p4 }
  0x54   : > { %p3856_p3 = pneg %p3855_p2 }
  0x56   : > { %p3863_p11 = pnand %p3862_p8, %p3856_p3 }
  0x58   : > { %3866 = shalt.err (!%p3863_p11)
}
  0x59   : > { %s4122_s16 = smov 128   ;;  %s4123_s1 = smov 8  }
  0x5a   : > { %3731 = dma.hbm_to_vmem [thread:$0]  (!%p4281_p12), %s4898_s7, 2688, %s4285_s18, [#allocation9], %s4122_s16, %s4122_s16, %s4123_s1  }
  0x5b   : > { %s3867_s19 = scalar_lea.hbm %s4856_s11, 1024 }
  0x5c   : > { %p3868_p13 = scmp.ne.s32.totalorder %s4856_s11, %s3867_s19  ;;  %p3874_p5 = scmp.lt.u32.totalorder %s3867_s19, %s4856_s11 }
  0x5e   : > { %p3870_p1 = pnand %p3868_p13, %p4297_p0 }
  0x60   : > { %p3871_p6 = pneg %p3870_p1 }
  0x62   : > { %p3876_p9 = pnand %p3874_p5, %p3871_p6 }
  0x64   : > { %3879 = shalt.err (!%p3876_p9)
}
  0x65   : > { %s3880_s27 = scalar_lea.vmem %s519_s26, 1024  ;;  %p3888_p4 = scmp.lt.s32.totalorder %s519_s26, %s519_s26 }
  0x66   : > { %p3881_p10 = scmp.ne.s32.totalorder %s519_s26, %s3880_s27  ;;  %p3889_p7 = scmp.lt.s32.totalorder %s3880_s27, %s3880_s27 }
  0x68   : > { %p3883_p2 = pnand %p3881_p10, %p4297_p0  ;;  %p3890_p8 = por %p3889_p7, %p3888_p4 }
  0x6a   : > { %p3884_p3 = pneg %p3883_p2 }
  0x6c   : > { %p3891_p11 = pnand %p3890_p8, %p3884_p3 }
  0x6e   : > { %3894 = shalt.err (!%p3891_p11)
}
  0x6f   : > { %3737 = dma.hbm_to_vmem [thread:$0]  (!%p4281_p12), %s4856_s11, 1024, %s519_s26, [#allocation12], %s4122_s16, %s4122_s16, %s4123_s1  }
  0x70   : > { %s4124_s20 = smov [#allocation2]   ;;  %s4125_s30 = smov [#allocation7]  }
  0x71   : > { %s440_s22 = sshll.u32 %s4124_s20, 4  ;;  %s467_s19 = sshll.u32 %s4125_s30, 4  ;;  %s441_s22 = int_to_ptr.vmem [resolvable:$true] %s440_s22  ;;  %s468_s19 = int_to_ptr.vmem [resolvable:$true] %s467_s19 }
  0x72   : > { %s4899_s23 = sld [smem:[#allocation32_spill]] }
  0x78   : > { %s3895_s27 = scalar_lea.hbm %s4899_s23, 768 }
  0x79   : > { %p3896_p13 = scmp.ne.s32.totalorder %s4899_s23, %s3895_s27  ;;  %p3902_p5 = scmp.lt.u32.totalorder %s3895_s27, %s4899_s23 }
  0x7b   : > { %p3898_p1 = pnand %p3896_p13, %p4297_p0 }
  0x7d   : > { %p3899_p6 = pneg %p3898_p1 }
  0x7f   : > { %p3904_p9 = pnand %p3902_p5, %p3899_p6 }
  0x81   : > { %3907 = shalt.err (!%p3904_p9)
}
  0x82   : > { %s3908_s26 = scalar_lea.vmem %s441_s22, 768  ;;  %p3916_p4 = scmp.lt.s32.totalorder %s441_s22, %s441_s22 }
  0x83   : > { %p3909_p10 = scmp.ne.s32.totalorder %s441_s22, %s3908_s26  ;;  %p3917_p7 = scmp.lt.s32.totalorder %s3908_s26, %s3908_s26 }
  0x85   : > { %p3911_p2 = pnand %p3909_p10, %p4297_p0  ;;  %p3918_p8 = por %p3917_p7, %p3916_p4 }
  0x87   : > { %p3912_p3 = pneg %p3911_p2 }
  0x89   : > { %p3919_p11 = pnand %p3918_p8, %p3912_p3 }
  0x8b   : > { %3922 = shalt.err (!%p3919_p11)
}
  0x8c   : > { %3722 = dma.hbm_to_vmem [thread:$0]  (!%p4281_p12), %s4899_s23, 768, %s441_s22, [#allocation3], %s4122_s16, %s4122_s16, %s4123_s1  }
  0x8d   : > { %s3923_s20 = scalar_lea.hbm %s4849_s4, 256 }
  0x8e   : > { %p3924_p13 = scmp.ne.s32.totalorder %s4849_s4, %s3923_s20  ;;  %p3930_p5 = scmp.lt.u32.totalorder %s3923_s20, %s4849_s4 }
  0x90   : > { %p3926_p1 = pnand %p3924_p13, %p4297_p0 }
  0x92   : > { %p3927_p6 = pneg %p3926_p1 }
  0x94   : > { %p3932_p9 = pnand %p3930_p5, %p3927_p6 }
  0x96   : > { %3935 = shalt.err (!%p3932_p9)
}
  0x97   : > { %s3936_s3 = scalar_lea.vmem %s468_s19, 256  ;;  %p3944_p4 = scmp.lt.s32.totalorder %s468_s19, %s468_s19 }
  0x98   : > { %p3937_p10 = scmp.ne.s32.totalorder %s468_s19, %s3936_s3  ;;  %p3945_p7 = scmp.lt.s32.totalorder %s3936_s3, %s3936_s3 }
  0x9a   : > { %p3939_p2 = pnand %p3937_p10, %p4297_p0  ;;  %p3946_p8 = por %p3945_p7, %p3944_p4 }
  0x9c   : > { %p3940_p3 = pneg %p3939_p2 }
  0x9e   : > { %p3947_p11 = pnand %p3946_p8, %p3940_p3 }
  0xa0   : > { %3950 = shalt.err (!%p3947_p11)
}
  0xa1   : > { %3728 = dma.hbm_to_vmem [thread:$0]  (!%p4281_p12), %s4849_s4, 256, %s468_s19, [#allocation6], %s4122_s16, %s4122_s16, %s4123_s1  }
  0xa2   : > { %s4126_s7 = smov [#allocation10]   ;;  %s4127_s25 = smov [#allocation13]  }
  0xa3   : > { %s505_s14 = sshll.u32 %s4126_s7, 4  ;;  %s534_s18 = sshll.u32 %s4127_s25, 4  ;;  %s506_s14 = int_to_ptr.vmem [resolvable:$true] %s505_s14  ;;  %s535_s18 = int_to_ptr.vmem [resolvable:$true] %s534_s18 }
  0xa4   : > { %s3951_s0 = scalar_lea.hbm %s4855_s10, 2560 }
  0xa5   : > { %p3952_p13 = scmp.ne.s32.totalorder %s4855_s10, %s3951_s0  ;;  %p3958_p5 = scmp.lt.u32.totalorder %s3951_s0, %s4855_s10 }
  0xa7   : > { %p3954_p1 = pnand %p3952_p13, %p4297_p0 }
  0xa9   : > { %p3955_p6 = pneg %p3954_p1 }
  0xab   : > { %p3960_p9 = pnand %p3958_p5, %p3955_p6 }
  0xad   : > { %3963 = shalt.err (!%p3960_p9)
}
  0xae   : > { %s3964_s19 = scalar_lea.vmem %s506_s14, 2560  ;;  %p3972_p4 = scmp.lt.s32.totalorder %s506_s14, %s506_s14 }
  0xaf   : > { %p3965_p10 = scmp.ne.s32.totalorder %s506_s14, %s3964_s19  ;;  %p3973_p7 = scmp.lt.s32.totalorder %s3964_s19, %s3964_s19 }
  0xb1   : > { %p3967_p2 = pnand %p3965_p10, %p4297_p0  ;;  %p3974_p8 = por %p3973_p7, %p3972_p4 }
  0xb3   : > { %p3968_p3 = pneg %p3967_p2 }
  0xb5   : > { %p3975_p11 = pnand %p3974_p8, %p3968_p3 }
  0xb7   : > { %3978 = shalt.err (!%p3975_p11)
}
  0xb8   : > { %3734 = dma.hbm_to_vmem [thread:$0]  (!%p4281_p12), %s4855_s10, 2560, %s506_s14, [#allocation9], %s4122_s16, %s4122_s16, %s4123_s1  }
  0xb9   : > { %s3979_s30 = scalar_lea.hbm %s4858_s13, 2048 }
  0xba   : > { %p3980_p13 = scmp.ne.s32.totalorder %s4858_s13, %s3979_s30  ;;  %p3986_p5 = scmp.lt.u32.totalorder %s3979_s30, %s4858_s13 }
  0xbc   : > { %p3982_p1 = pnand %p3980_p13, %p4297_p0 }
  0xbe   : > { %p3983_p6 = pneg %p3982_p1 }
  0xc0   : > { %p3988_p9 = pnand %p3986_p5, %p3983_p6 }
  0xc2   : > { %3991 = shalt.err (!%p3988_p9)
}
  0xc3   : > { %s3992_s22 = scalar_lea.vmem %s535_s18, 2048  ;;  %p4000_p4 = scmp.lt.s32.totalorder %s535_s18, %s535_s18 }
  0xc4   : > { %p3993_p10 = scmp.ne.s32.totalorder %s535_s18, %s3992_s22  ;;  %p4001_p7 = scmp.lt.s32.totalorder %s3992_s22, %s3992_s22 }
  0xc6   : > { %p3995_p2 = pnand %p3993_p10, %p4297_p0  ;;  %p4002_p8 = por %p4001_p7, %p4000_p4 }
  0xc8   : > { %p3996_p3 = pneg %p3995_p2 }
  0xca   : > { %p4003_p11 = pnand %p4002_p8, %p3996_p3 }
  0xcc   : > { %4006 = shalt.err (!%p4003_p11)
}
  0xcd   : > { %3740 = dma.hbm_to_vmem [thread:$0]  (!%p4281_p12), %s4858_s13, 2048, %s535_s18, [#allocation12], %s4122_s16, %s4122_s16, %s4123_s1  }
  0xce   : > { %s4128_s26 = smov [#allocation14]   ;;  %s4007_s30 = scalar_lea.hbm %s4860_s15, 2048 }
  0xcf   : > { %s550_s7 = sshll.u32 %s4128_s26, 4  ;;  %p4008_p13 = scmp.ne.s32.totalorder %s4860_s15, %s4007_s30  ;;  %s551_s7 = int_to_ptr.vmem [resolvable:$true] %s550_s7 }
  0xd0   : > { %p4014_p5 = scmp.lt.u32.totalorder %s4007_s30, %s4860_s15 }
  0xd1   : > { %p4010_p1 = pnand %p4008_p13, %p4297_p0 }
  0xd3   : > { %p4011_p6 = pneg %p4010_p1 }
  0xd5   : > { %p4016_p9 = pnand %p4014_p5, %p4011_p6 }
  0xd7   : > { %4019 = shalt.err (!%p4016_p9)
}
  0xd8   : > { %s4020_s18 = scalar_lea.vmem %s551_s7, 2048  ;;  %p4028_p4 = scmp.lt.s32.totalorder %s551_s7, %s551_s7 }
  0xd9   : > { %p4021_p10 = scmp.ne.s32.totalorder %s551_s7, %s4020_s18  ;;  %p4029_p7 = scmp.lt.s32.totalorder %s4020_s18, %s4020_s18 }
  0xdb   : > { %p4023_p2 = pnand %p4021_p10, %p4297_p0  ;;  %p4030_p8 = por %p4029_p7, %p4028_p4 }
  0xdd   : > { %p4024_p3 = pneg %p4023_p2 }
  0xdf   : > { %p4031_p11 = pnand %p4030_p8, %p4024_p3 }
  0xe1   : > { %4034 = shalt.err (!%p4031_p11)
}
  0xe2   : > { %3743 = dma.hbm_to_vmem [thread:$0]  (!%p4281_p12), %s4860_s15, 2048, %s551_s7, [#allocation15], %s4122_s16, %s4122_s16, %s4123_s1  }
  0xe3   : > { %p4900_p13 = scmp.ne.s32.totalorder %s4894_s21, 0 }
  0xe4   : > { %p4901_p0 = scmp.eq.s32.totalorder (!%p4900_p13), %s4245_s28, 0 }
  0xe5   : > { %577 = sbr.rel (%p4900_p13) target bundleno = 2939 (0xb7b), region = 88 }
  0xec   : > { %4080 = dma.done.wait (%p4901_p0), [#allocation3], 768   ;;  %p4902_p1 = pmov %p4901_p0 }
  0xed   : > { %p4903_p6 = pmov %p4901_p0 }
  0xee   : > { %4082 = vsyncadd (%p4902_p1), [#allocation3], 4294966528 }
  0xef   : > { %4084 = dma.done.wait (%p4903_p6), [#allocation6], 272   ;;  %p4904_p5 = pmov %p4901_p0 }
  0xf0   : > { %p4905_p9 = pmov %p4901_p0 }
  0xf1   : > { %4086 = vsyncadd (%p4904_p5), [#allocation6], 4294967024 }
  0xf2   : > { %4088 = dma.done.wait (%p4905_p9), [#allocation9], 5248   ;;  %p4906_p12 = pmov %p4901_p0 }
  0xf3   : > { %p4907_p10 = pmov %p4901_p0 }
  0xf4   : > { %4090 = vsyncadd (%p4906_p12), [#allocation9], 4294962048 }
  0xf5   : > { %4092 = dma.done.wait (%p4907_p10), [#allocation12], 3072   ;;  %p4908_p2 = pmov %p4901_p0 }
  0xf6   : > { %p4909_p3 = pmov %p4901_p0 }
  0xf7   : > { %4094 = vsyncadd (%p4908_p2), [#allocation12], 4294964224 }
  0xf8   : > { %4096 = dma.done.wait (%p4909_p3), [#allocation15], 2048   ;;  %p4910_p4 = pmov %p4901_p0 }
  0xf9   : > { %p656_p7 = scmp.lt.s32.totalorder %s4245_s28, 1  ;;  %s4911_s1 = sld [smem:[#allocation31_spill]]  ;;  %vm665_vm0 = vcmask 130048   ;;  %v756_v2 = vld [vmem:[#allocation2 + $0x10] sm:$0xff]  ;;  %v663_v4 = vld [vmem:[#allocation2] sm:$0xff]  ;;  %v2839_v6 = vld [vmem:[%s4847_s2 + $0x48] sm:$0xff] }
  0xfa   : > { %4098 = vsyncadd (%p4910_p4), [#allocation15], 4294965248  ;;  %3097 = vmatprep.mubr.msk.f32.mxu1 %vm665_vm0, %v756_v2  ;;  %3090 = vmatprep.mubr.msk.f32.mxu0 %vm665_vm0, %v663_v4  ;;  %v2838_v5 = vld [vmem:[%s4847_s2 + $0x40] sm:$0xff]  ;;  %v2840_v7 = vld [vmem:[%s4847_s2 + $0x50] sm:$0xff]  ;;  %vm848_vm1 = vcmask 523264   ;;  %v4129_v51 = vmov 0.0|0.0  }
  0xfb   : > { %s657_s17 = scalar_select %p656_p7, %s4245_s28, 1  ;;  %v2841_v8 = vld [vmem:[%s4847_s2 + $0x58] sm:$0xff]  ;;  %v664_v10 = vld [vmem:[#allocation2 + $0x8] sm:$0x3f]  ;;  %v3462_v11 = vpack.c.bf16 %v2839_v6, %v2838_v5  ;;  %v1012_v12 = vld [vmem:[#allocation2 + $0x20] sm:$0xff]  ;;  %vm4130_vm2 = vmmov 0  }
  0xfc   : > { %v757_v9 = vld [vmem:[#allocation2 + $0x18] sm:$0x3f]  ;;  %v3466_v13 = vpack.c.bf16 %v2841_v8, %v2840_v7  ;;  %v2842_v14 = vld [vmem:[%s4847_s2 + $0x60] sm:$0xff]  ;;  %v2843_v15 = vld [vmem:[%s4847_s2 + $0x68] sm:$0xff]  ;;  %v4131_v52 = vmov 0.0   ;;  %vm1203_vm3 = vcmask 1045504  }
  0xfd   : > { %s2907_s21 = sshll.u32 %s657_s17, 4  ;;  %v1013_v16 = vld [vmem:[#allocation2 + $0x28] sm:$0x3f]  ;;  %v3470_v17 = vpack.c.bf16 %v2843_v15, %v2842_v14  ;;  %v2844_v18 = vld [vmem:[%s4847_s2 + $0x70] sm:$0xff]  ;;  %v2845_v19 = vld [vmem:[%s4847_s2 + $0x78] sm:$0xff]  ;;  %vm4132_vm4 = vmmov 1  }
  0xfe   : > { %v3474_v20 = vpack.c.bf16 %v2845_v19, %v2844_v18  ;;  %v747_v21 = vld [vmem:[%s4847_s2] sm:$0xff]  ;;  %v748_v22 = vld [vmem:[%s4847_s2 + $0x8] sm:$0xff]  ;;  %v749_v24 = vld [vmem:[%s4847_s2 + $0x10] sm:$0xff]  ;;  %vm1199_vm6 = vcmask 113664   ;;  %vm1367_vm7 = vcmask 916480   ;;  %vm1532_vm8 = vcmask 1046528  }
  0xff   : > { %s660_s19 = scalar_lea.vmem %s4911_s1, %s2907_s21  ;;  %v3478_v23 = vpack.c.bf16 %v748_v22, %v747_v21  ;;  %v750_v25 = vld [vmem:[%s4847_s2 + $0x18] sm:$0xff]  ;;  %v751_v31 = vld [vmem:[%s4847_s2 + $0x20] sm:$0xff]  ;;  %v752_v32 = vld [vmem:[%s4847_s2 + $0x28] sm:$0xff]  ;;  %vm1528_vm9 = vcmask 56320   ;;  %vm1696_vm10 = vcmask 457728   ;;  %vm2014_vm11 = vcmask 1044480  }
 0x100   : > { %v661_v0 = vld [vmem:[%s660_s19] sm:$0xff]  ;;  %v662_v1 = vld [vmem:[%s660_s19 + $0x8] sm:$0xff]  ;;  %v3482_v29 = vpack.c.bf16 %v750_v25, %v749_v24  ;;  %v3486_v34 = vpack.c.bf16 %v752_v32, %v751_v31  ;;  %v753_v36 = vld [vmem:[%s4847_s2 + $0x30] sm:$0xff]  ;;  %vm2010_vm12 = vcmask 39936   ;;  %vm2174_vm13 = vcmask 654336   ;;  %s4912_s22 = sld [smem:[#allocation24_spill]] }
 0x101   : > { %v3454_v3 = vpack.c.bf16 %v662_v1, %v661_v0  ;;  %v754_v37 = vld [vmem:[%s4847_s2 + $0x38] sm:$0xff]  ;;  %v2852_v39 = vld [vmem:[%s4847_s2 + $0x80] sm:$0xff]  ;;  %v2853_v40 = vld [vmem:[%s4847_s2 + $0x88] sm:$0xff]  ;;  %vm2341_vm14 = vcmask 261120   ;;  %s4913_s21 = sld [smem:[#allocation35_spill]]  ;;  %s4914_s29 = sld [smem:[#allocation29_spill]] }
 0x102   : > { %v3490_v38 = vpack.c.bf16 %v754_v37, %v753_v36  ;;  %v3498_v41 = vpack.c.bf16 %v2853_v40, %v2852_v39  ;;  %v2854_v42 = vld [vmem:[%s4847_s2 + $0x90] sm:$0xff]  ;;  %v2855_v43 = vld [vmem:[%s4847_s2 + $0x98] sm:$0xff]  ;;  %v2856_v45 = vld [vmem:[%s4847_s2 + $0xa0] sm:$0xff]  ;;  %s4915_s26 = sld [smem:[#allocation36_spill]]  ;;  %s2904_s7 = sshll.u32 %s4245_s28, 4 }
 0x103   : > { %3459 = vmatprep.subr.bf16.mxu1 %v3454_v3  ;;  %3455 = vmatprep.subr.bf16.mxu0 %v3454_v3  ;;  %v3502_v44 = vpack.c.bf16 %v2855_v43, %v2854_v42  ;;  %v2857_v46 = vld [vmem:[%s4847_s2 + $0xa8] sm:$0xff]  ;;  %v2858_v48 = vld [vmem:[%s4847_s2 + $0xb0] sm:$0xff]  ;;  %v2859_v49 = vld [vmem:[%s4847_s2 + $0xb8] sm:$0xff]  ;;  %s4916_s24 = sld [smem:[#allocation37_spill]]  ;;  %s4133_s28 = smov [#allocation16]  }
 0x104   : > { %3461 = vmatpush3.bf16.msra.mxu1 %v3454_v3  ;;  %3457 = vmatpush3.bf16.msra.mxu0 %v3454_v3  ;;  %v3506_v47 = vpack.c.bf16 %v2857_v46, %v2856_v45  ;;  %v3510_v50 = vpack.c.bf16 %v2859_v49, %v2858_v48  ;;  %v2862_v53 = vld [vmem:[#allocation5] ss:$0 sm:$0xff]  ;;  %vm3516_vm5 = vmpackc.low %vm1203_vm3, %vm4132_vm4  ;;  %v1198_v61 = vld [vmem:[#allocation7] sm:$0x7f]  ;;  %s4039_s14 = sshll.u32 %s4133_s28, 4  ;;  %s4040_s14 = int_to_ptr.vmem [resolvable:$false] %s4039_s14 }
 0x105   : > { %3495 = vmatprep.subr.bf16.mxu1 %v3454_v3  ;;  %3463 = vmatprep.subr.bf16.mxu0 %v3462_v11  ;;  %v1353_v62 = vld [vmem:[%s4850_s5] sm:$0xff]  ;;  %v1354_v63 = vld [vmem:[%s4850_s5 + $0x8] sm:$0xff]  ;;  %v1355_v2 = vld [vmem:[%s4850_s5 + $0x10] sm:$0xff]  ;;  %s4041_s17 = scalar_lea.vmem %s4040_s14, 32 }
 0x106   : > { %v1278_v0 = vld [vmem:[#allocation7 + $0x8] sm:$0x7f]  ;;  %v3523_v1 = vpack.c.bf16 %v1354_v63, %v1353_v62  ;;  %v1358_v6 = vld [vmem:[%s4850_s5 + $0x28] sm:$0xff]  ;;  %v1359_v8 = vld [vmem:[%s4850_s5 + $0x30] sm:$0xff]  ;;  %s654_s16 = sand.u32 1, %s4912_s22  }
 0x107   : > { %3098 = vmatmul.mubr.msk.f32.vlgmr.msra.gmra.mrb[0].mxu1 %vm665_vm0, %v757_v9  ;;  %3091 = vmatmul.mubr.msk.f32.vlgmr.msra.gmra.mrb[0].mxu0 %vm665_vm0, %v664_v10  ;;  %v1357_v5 = vld [vmem:[%s4850_s5 + $0x20] sm:$0xff]  ;;  %v1360_v9 = vld [vmem:[%s4850_s5 + $0x38] sm:$0xff]  ;;  %v1363_v14 = vld [vmem:[%s4850_s5 + $0x50] sm:$0xff]  ;;  %s655_s25 = scalar_lea.vmem [#allocation16], %s654_s16  ;;  %s2666_s18 = scalar_lea.sflag [#allocation4], %s654_s16 }
 0x108   : > { %3497 = vmatpush3.bf16.msra.mxu1 %v3454_v3  ;;  %3142 = vmatprep.mubr.msk.f32.mxu1 %vm665_vm0, %v1012_v12  ;;  %v1356_v3 = vld [vmem:[%s4850_s5 + $0x18] sm:$0xff]  ;;  %v3529_v7 = vpack.c.bf16 %v1358_v6, %v1357_v5  ;;  %v3532_v10 = vpack.c.bf16 %v1360_v9, %v1359_v8  ;;  %v1362_v12 = vld [vmem:[%s4850_s5 + $0x48] sm:$0xff]  ;;  %v2868_v22 = vld [vmem:[%s4850_s5 + $0x70] sm:$0xff]  ;;  %s2678_s20 = sshll.u32 %s655_s25, 4  ;;  %p4918_p11 = scmp.ne.s32.totalorder %s4914_s29, 0  ;;  %s4805_s20 = int_to_ptr.vmem [resolvable:$true] %s2678_s20 }
 0x109   : > { %3465 = vmatpush3.bf16.msra.mxu0 %v3462_v11  ;;  %3514 = vmatprep.subr.bf16.mxu1 %v4129_v51  ;;  %v3526_v4 = vpack.c.bf16 %v1356_v3, %v1355_v2  ;;  %v1361_v11 = vld [vmem:[%s4850_s5 + $0x40] sm:$0xff]  ;;  %v1364_v15 = vld [vmem:[%s4850_s5 + $0x58] sm:$0xff]  ;;  %v1366_v18 = vld [vmem:[%s4850_s5 + $0x68] sm:$0xff]  ;;  %s4917_s3 = smov %s4916_s24  ;;  %s4803_s27 = scalar_lea.hbm %s4916_s24, %s2904_s7 }
 0x10a   : > { %3467 = vmatprep.subr.bf16.mxu0 %v3466_v13  ;;  %v2872_v31 = vld [vmem:[%s4850_s5 + $0x90] sm:$0xff]  ;;  %v2873_v32 = vld [vmem:[%s4850_s5 + $0x98] sm:$0xff]  ;;  %v2878_v40 = vld [vmem:[%s4850_s5 + $0xc0] sm:$0xff]  ;;  %s4035_s22 = scalar_lea.vmem %s4805_s20, 16  ;;  %p4042_p1 = scmp.lt.s32.totalorder %s4805_s20, %s4040_s14 }
 0x10b   : > { %3143 = vmatmul.mubr.msk.f32.vlgmr.msra.gmra.mrb[2].mxu1 %vm665_vm0, %v1013_v16  ;;  %v3538_v16 = vpack.c.bf16 %v1364_v15, %v1363_v14  ;;  %v2876_v37 = vld [vmem:[%s4850_s5 + $0xb0] sm:$0xff]  ;;  %v1606_v46 = vld [vmem:[#allocation8] sm:$0xff]  ;;  %v1689_v63 = vld [vmem:[#allocation8 + $0x38] sm:$0xff]  ;;  %p4036_p8 = scmp.ne.s32.totalorder %s4805_s20, %s4035_s22  ;;  %p4043_p6 = scmp.lt.s32.totalorder %s4041_s17, %s4035_s22 }
 0x10c   : > { %3168 = vmatprep.mubr.msk.f32.mxu1 %vm4130_vm2, %v4131_v52  ;;  %v2880_v43 = vld [vmem:[%s4850_s5 + $0xd0] sm:$0xff]  ;;  %v1527_v62 = vld [vmem:[%s4851_s6] sm:$0x1f] }
 0x10d   : > { %3469 = vmatpush3.bf16.msra.mxu0 %v3466_v13  ;;  %v3535_v13 = vpack.c.bf16 %v1362_v12, %v1361_v11  ;;  %v1608_v49 = vld [vmem:[#allocation8 + $0x10] sm:$0xff]  ;;  %v1691_v3 = vld [vmem:[#allocation8 + $0x48] sm:$0xff]  ;;  %v1693_v6 = vld [vmem:[#allocation8 + $0x58] sm:$0xff]  ;;  %p4037_p13 = pnand %p4036_p8, %p4918_p11  ;;  %p4044_p5 = por %p4043_p6, %p4042_p1 }
 0x10e   : > { %3471 = vmatprep.subr.bf16.mxu0 %v3470_v17  ;;  %v1612_v9 = vld [vmem:[#allocation8 + $0x30] sm:$0xff]  ;;  %v1920_v14 = vld [vmem:[#allocation8 + $0x78] sm:$0xff] }
 0x10f   : > { %p4038_p0 = pneg %p4037_p13 }
 0x111   : > { %3473 = vmatpush3.bf16.msra.mxu0 %v3470_v17  ;;  %v1365_v17 = vld [vmem:[%s4850_s5 + $0x60] sm:$0xff]  ;;  %p4045_p9 = pnand %p4044_p5, %p4038_p0 }
 0x112   : > { %3475 = vmatprep.subr.bf16.mxu0 %v3474_v20  ;;  %v3541_v19 = vpack.c.bf16 %v1366_v18, %v1365_v17  ;;  %v2890_v17 = vld [vmem:[%s4851_s6 + $0x10] sm:$0x1f] }
 0x115   : > { %3477 = vmatpush3.bf16.msra.mxu0 %v3474_v20 }
 0x116   : > { %3479 = vmatprep.subr.bf16.mxu0 %v3478_v23 }
 0x1da   : > { %v3099_v26 = vpop.f32.mrb[0].mxu1  ;;  %v3092_v27 = vpop.f32.mrb[0].mxu0 }
 0x1db   : > { %v830_v28 = vpop.f32.mrb[1].mxu1  ;;  %v738_v30 = vpop.f32.mrb[1].mxu0 }
 0x1dc   : > { %3116 = vmatprep.mubr.msk.f32.mxu0 %vm848_vm1, %v830_v28  ;;  %v2870_v28 = vld [vmem:[%s4850_s5 + $0x80] sm:$0xff] }
 0x1dd   : > { %3117 = vmatmul.mubr.msk.f32.vlgmr.msra.gmra.mrb[2].mxu0 %vm848_vm1, %v3099_v26 }
 0x1de   : > { %3481 = vmatpush3.bf16.msra.mxu0 %v3478_v23  ;;  %3135 = vmatprep.mubr.msk.f32.mxu0 %vm848_vm1, %v738_v30  ;;  %v3144_v33 = vpop.f32.mrb[2].mxu1  ;;  %v2869_v23 = vld [vmem:[%s4850_s5 + $0x78] sm:$0xff] }
 0x1df   : > { %3483 = vmatprep.subr.bf16.mxu0 %v3482_v29  ;;  %v1086_v35 = vpop.f32.mrb[3].mxu1  ;;  %v3544_v25 = vpack.c.bf16 %v2869_v23, %v2868_v22  ;;  %v1923_v22 = vld [vmem:[#allocation8 + $0x90] sm:$0xff]  ;;  %v1924_v23 = vld [vmem:[#allocation8 + $0x98] sm:$0xff] }
 0x1e2   : > { %3485 = vmatpush3.bf16.msra.mxu0 %v3482_v29  ;;  %v2871_v29 = vld [vmem:[%s4850_s5 + $0x88] sm:$0xff] }
 0x1e3   : > { %3487 = vmatprep.subr.bf16.mxu0 %v3486_v34  ;;  %v3547_v30 = vpack.c.bf16 %v2871_v29, %v2870_v28 }
 0x1e6   : > { %3489 = vmatpush3.bf16.msra.mxu0 %v3486_v34  ;;  %v2874_v34 = vld [vmem:[%s4850_s5 + $0xa0] sm:$0xff] }
 0x1e7   : > { %3491 = vmatprep.subr.bf16.mxu0 %v3490_v38 }
 0x1ea   : > { %3493 = vmatpush3.bf16.msra.mxu0 %v3490_v38  ;;  %v2877_v38 = vld [vmem:[%s4850_s5 + $0xb8] sm:$0xff] }
 0x1eb   : > { %3499 = vmatprep.subr.bf16.mxu0 %v3498_v41  ;;  %v3556_v39 = vpack.c.bf16 %v2877_v38, %v2876_v37  ;;  %v2167_v37 = vld [vmem:[#allocation10 + $0x18] sm:$0xff] }
 0x1ed   : > { %3136 = vmatmul.mubr.msk.f32.vlgmr.msra.gmra.mrb[2].mxu0 %vm848_vm1, %v3092_v27 }
 0x1ee   : > { %3501 = vmatpush3.bf16.msra.mxu0 %v3498_v41  ;;  %3161 = vmatprep.mubr.msk.f32.mxu0 %vm848_vm1, %v1086_v35  ;;  %v2875_v35 = vld [vmem:[%s4850_s5 + $0xa8] sm:$0xff] }
 0x1ef   : > { %3503 = vmatprep.subr.bf16.mxu0 %v3502_v44  ;;  %v3553_v36 = vpack.c.bf16 %v2875_v35, %v2874_v34  ;;  %v2879_v41 = vld [vmem:[%s4850_s5 + $0xc8] sm:$0xff]  ;;  %v2165_v34 = vld [vmem:[#allocation10 + $0x8] sm:$0xff] }
 0x1f0   : > { %v3559_v42 = vpack.c.bf16 %v2879_v41, %v2878_v40  ;;  %v2169_v40 = vld [vmem:[#allocation10 + $0x28] sm:$0xff] }
 0x1f2   : > { %3505 = vmatpush3.bf16.msra.mxu0 %v3502_v44  ;;  %v2881_v44 = vld [vmem:[%s4850_s5 + $0xd8] sm:$0xff] }
 0x1f3   : > { %3507 = vmatprep.subr.bf16.mxu0 %v3506_v47  ;;  %v3562_v45 = vpack.c.bf16 %v2881_v44, %v2880_v43  ;;  %v2171_v43 = vld [vmem:[#allocation10 + $0x38] sm:$0xff] }
 0x1f6   : > { %3509 = vmatpush3.bf16.msra.mxu0 %v3506_v47  ;;  %v1607_v47 = vld [vmem:[#allocation8 + $0x8] sm:$0xff] }
 0x1f7   : > { %3511 = vmatprep.subr.bf16.mxu0 %v3510_v50  ;;  %v3574_v48 = vpack.c.bf16 %v1607_v47, %v1606_v46  ;;  %v2894_v46 = vld [vmem:[%s4853_s8] ss:$0 sm:$0xff] }
 0x1fa   : > { %3513 = vmatpush3.bf16.msra.mxu0 %v3510_v50  ;;  %v1609_v50 = vld [vmem:[#allocation8 + $0x18] sm:$0xff] }
 0x1fb   : > { %3240 = vmatprep.subr.mxu0 %v4131_v52 }
 0x1fd   : > { %3162 = vmatmul.mubr.msk.f32.vlgmr.msra.gmra.mrb[2].mxu0 %vm848_vm1, %v3144_v33  ;;  %v3550_v33 = vpack.c.bf16 %v2873_v32, %v2872_v31 }
 0x1fe   : > { %3242 = vmatprep.mubr.msk.f32.mxu0 %vm4130_vm2, %v4131_v52 }
 0x2d0   : > { %v3163_v54 = vpop.f32.mrb[2].mxu0 }
 0x2d1   : > { %v1195_v55 = vadd.f32 %v3163_v54, %v2862_v53  ;;  %v1176_v56 = vpop.f32.mrb[3].mxu0  ;;  %v1610_v54 = vld [vmem:[#allocation8 + $0x20] sm:$0xff] }
 0x2d2   : > { %v1194_v57 = vadd.f32 %v2862_v53, %v1176_v56  ;;  %v3577_v53 = vpack.c.bf16 %v1609_v50, %v1608_v49 }
 0x2d3   : > { %v1197_v58 = vmax.f32 %v1195_v55, 0.0  ;;  %v1611_v55 = vld [vmem:[#allocation8 + $0x28] sm:$0xff] }
 0x2d4   : > { %v1196_v59 = vmax.f32 %v1194_v57, 0.0  ;;  %v3580_v56 = vpack.c.bf16 %v1611_v55, %v1610_v54  ;;  %v2249_v54 = vld [vmem:[#allocation10 + $0x50] sm:$0xff]  ;;  %v2250_v55 = vld [vmem:[#allocation10 + $0x58] sm:$0xff] }
 0x2d6   : > { %v3515_v60 = vpack.c.bf16 %v1197_v58, %v1196_v59 }
 0x2d8   : > { %3517 = vmatpush3.bf16.msk.msra.mxu1 %vm3516_vm5, %v3515_v60 }
 0x2d9   : > { %3518 = vmatprep.subr.bf16.mxu1 %v4129_v51 }
 0x2db   : > { %3169 = vmatmul.mubr.msk.f32.vlgmr.msra.gmra.mrb[4].mxu1 %vm1199_vm6, %v1198_v61 }
 0x2dc   : > { %3521 = vmatpush3.bf16.msk.msra.mxu1 %vm3516_vm5, %v3515_v60  ;;  %3175 = vmatprep.mubr.msk.f32.mxu1 %vm4130_vm2, %v4131_v52 }
 0x2dd   : > { %3522 = vmatprep.subr.bf16.mxu1 %v4129_v51 }
 0x2df   : > { %3176 = vmatmul.mubr.msk.f32.vlgmr.msra.gmra.mrb[6].mxu1 %vm1199_vm6, %v1278_v0  ;;  %v1690_v0 = vld [vmem:[#allocation8 + $0x40] sm:$0xff] }
 0x2e0   : > { %3524 = vmatpush3.bf16.msra.mxu1 %v3523_v1  ;;  %3206 = vmatprep.mubr.msk.f32.mxu1 %vm4130_vm2, %v4131_v52  ;;  %v2885_v1 = vld [vmem:[%s4851_s6 + $0x8] sm:$0x1f]  ;;  %v3565_v2 = vpack.c.bf16 %v1690_v0, %v1689_v63 }
 0x2e1   : > { %3525 = vmatprep.subr.bf16.mxu1 %v4129_v51  ;;  %v2255_v0 = vld [vmem:[#allocation10 + $0x80] sm:$0xff] }
 0x2e4   : > { %3527 = vmatpush3.bf16.msra.mxu1 %v3526_v4  ;;  %v1692_v4 = vld [vmem:[#allocation8 + $0x50] sm:$0xff] }
 0x2e5   : > { %3528 = vmatprep.subr.bf16.mxu1 %v4129_v51  ;;  %v3568_v5 = vpack.c.bf16 %v1692_v4, %v1691_v3  ;;  %v2172_v3 = vld [vmem:[#allocation10 + $0x40] sm:$0xff]  ;;  %v2173_v4 = vld [vmem:[#allocation10 + $0x48] sm:$0xff] }
 0x2e8   : > { %3530 = vmatpush3.bf16.msra.mxu1 %v3529_v7  ;;  %v1694_v7 = vld [vmem:[#allocation8 + $0x60] sm:$0xff] }
 0x2e9   : > { %3531 = vmatprep.subr.bf16.mxu1 %v4129_v51  ;;  %v3571_v8 = vpack.c.bf16 %v1694_v7, %v1693_v6  ;;  %v3604_v6 = vpack.c.bf16 %v2173_v4, %v2172_v3  ;;  %v2258_v7 = vld [vmem:[#allocation10 + $0x98] sm:$0xff] }
 0x2ea   : > { %v2584_v3 = vld [vmem:[#allocation14 + $0x38] sm:$0xff] }
 0x2ec   : > { %3533 = vmatpush3.bf16.msra.mxu1 %v3532_v10  ;;  %v1695_v10 = vld [vmem:[#allocation8 + $0x68] sm:$0xff] }
 0x2ed   : > { %3534 = vmatprep.subr.bf16.mxu1 %v4129_v51 }
 0x2f0   : > { %3536 = vmatpush3.bf16.msra.mxu1 %v3535_v13  ;;  %v1919_v13 = vld [vmem:[#allocation8 + $0x70] sm:$0xff] }
 0x2f1   : > { %3537 = vmatprep.subr.bf16.mxu1 %v4129_v51  ;;  %v3583_v18 = vpack.c.bf16 %v1920_v14, %v1919_v13  ;;  %v2335_v13 = vld [vmem:[#allocation11 + $0x20] sm:$0xff]  ;;  %v2336_v14 = vld [vmem:[#allocation11 + $0x28] sm:$0xff] }
 0x2f4   : > { %3539 = vmatpush3.bf16.msra.mxu1 %v3538_v16 }
 0x2f5   : > { %3540 = vmatprep.subr.bf16.mxu1 %v4129_v51 }
 0x2f8   : > { %3542 = vmatpush3.bf16.msra.mxu1 %v3541_v19  ;;  %v1921_v19 = vld [vmem:[#allocation8 + $0x80] sm:$0xff] }
 0x2f9   : > { %3543 = vmatprep.subr.bf16.mxu1 %v4129_v51 }
 0x3ae   : > { %v1273_v20 = vpop.f32.mrb[4].mxu1 }
 0x3af   : > { %v3170_v21 = vpop.f32.mrb[5].mxu1 }
 0x3b2   : > { %v1348_v24 = vpop.f32.mrb[6].mxu1 }
 0x3b3   : > { %v1352_v26 = vmax.f32 %v1273_v20, %v1348_v24  ;;  %v3177_v27 = vpop.f32.mrb[7].mxu1  ;;  %v1922_v20 = vld [vmem:[#allocation8 + $0x88] sm:$0xff]  ;;  %v3589_v24 = vpack.c.bf16 %v1924_v23, %v1923_v22  ;;  %v2337_v23 = vld [vmem:[#allocation11 + $0x30] sm:$0xff] }
 0x3b4   : > { %v3586_v21 = vpack.c.bf16 %v1922_v20, %v1921_v19  ;;  %v2332_v20 = vld [vmem:[#allocation11 + $0x10] sm:$0xff] }
 0x3b5   : > { %3207 = vmatmul.mubr.msk.f32.vlgmr.msra.gmra.mrb[8].mxu1 %vm1367_vm7, %v1352_v26 }
 0x3b6   : > { %3545 = vmatpush3.bf16.msra.mxu1 %v3544_v25  ;;  %3237 = vmatprep.mubr.msk.f32.mxu1 %vm4130_vm2, %v4131_v52  ;;  %v1925_v25 = vld [vmem:[#allocation8 + $0xa0] sm:$0xff] }
 0x3b7   : > { %3546 = vmatprep.subr.bf16.mxu1 %v4129_v51 }
 0x3ba   : > { %3548 = vmatpush3.bf16.msra.mxu1 %v3547_v30 }
 0x3bb   : > { %3549 = vmatprep.subr.bf16.mxu1 %v4129_v51 }
 0x3be   : > { %3551 = vmatpush3.bf16.msra.mxu1 %v3550_v33  ;;  %v2164_v33 = vld [vmem:[#allocation10] sm:$0xff] }
 0x3bf   : > { %3552 = vmatprep.subr.bf16.mxu1 %v4129_v51  ;;  %v3592_v35 = vpack.c.bf16 %v2165_v34, %v2164_v33 }
 0x3c2   : > { %3554 = vmatpush3.bf16.msra.mxu1 %v3553_v36  ;;  %v2166_v36 = vld [vmem:[#allocation10 + $0x10] sm:$0xff] }
 0x3c3   : > { %3555 = vmatprep.subr.bf16.mxu1 %v4129_v51  ;;  %v3595_v38 = vpack.c.bf16 %v2167_v37, %v2166_v36  ;;  %v2492_v36 = vld [vmem:[#allocation13 + $0x18] sm:$0xff] }
 0x3c6   : > { %3557 = vmatpush3.bf16.msra.mxu1 %v3556_v39  ;;  %v2168_v39 = vld [vmem:[#allocation10 + $0x20] sm:$0xff] }
 0x3c7   : > { %3558 = vmatprep.subr.bf16.mxu1 %v4129_v51  ;;  %v3598_v41 = vpack.c.bf16 %v2169_v40, %v2168_v39  ;;  %v2494_v39 = vld [vmem:[#allocation13 + $0x28] sm:$0xff] }
 0x3ca   : > { %3560 = vmatpush3.bf16.msra.mxu1 %v3559_v42  ;;  %v2170_v42 = vld [vmem:[#allocation10 + $0x30] sm:$0xff] }
 0x3cb   : > { %3561 = vmatprep.subr.bf16.mxu1 %v4129_v51  ;;  %v3601_v44 = vpack.c.bf16 %v2171_v43, %v2170_v42  ;;  %v2496_v42 = vld [vmem:[#allocation13 + $0x38] sm:$0xff] }
 0x3ce   : > { %3563 = vmatpush3.bf16.msra.mxu1 %v3562_v45 }
 0x3cf   : > { %3573 = vmatprep.subr.bf16.mxu1 %v4129_v51 }
 0x3d1   : > { %3238 = vmatmul.mubr.msk.f32.vlgmr.msra.gmra.mrb[10].mxu1 %vm1367_vm7, %v1352_v26 }
 0x3d2   : > { %3281 = vmatprep.mubr.msk.f32.mxu1 %vm4130_vm2, %v4131_v52  ;;  %3575 = vmatpush3.bf16.msra.mxu1 %v3574_v48 }
 0x3d3   : > { %3576 = vmatprep.subr.bf16.mxu1 %v4129_v51 }
 0x3d6   : > { %3578 = vmatpush3.bf16.msra.mxu1 %v3577_v53  ;;  %v2009_v53 = vld [vmem:[%s4854_s9] sm:$0x3] }
 0x3d7   : > { %3579 = vmatprep.subr.bf16.mxu1 %v4129_v51 }
 0x3da   : > { %3581 = vmatpush3.bf16.msra.mxu1 %v3580_v56  ;;  %v2897_v56 = vld [vmem:[%s4854_s9 + $0x2] sm:$0x3] }
 0x3db   : > { %3279 = vmatprep.subr.mxu1 %v4131_v52 }
 0x3de   : > { %3280 = vmatpush3.msra.mxu1 %v1612_v9 }
 0x3df   : > { %3306 = vmatprep.subr.mxu1 %v4131_v52 }
 0x488   : > { %v1437_v57 = vpop.f32.mrb[8].mxu1 }
 0x489   : > { %v3208_v58 = vpop.f32.mrb[9].mxu1 }
 0x48a   : > { %v2251_v58 = vld [vmem:[#allocation10 + $0x60] sm:$0xff] }
 0x4a4   : > { %v1522_v59 = vpop.f32.mrb[10].mxu1 }
 0x4a5   : > { %v1526_v60 = vmax.f32 %v1437_v57, %v1522_v59  ;;  %v3239_v61 = vpop.f32.mrb[11].mxu1  ;;  %v3607_v57 = vpack.c.bf16 %v2250_v55, %v2249_v54  ;;  %v2252_v59 = vld [vmem:[#allocation10 + $0x68] sm:$0xff]  ;;  %v2503_v54 = vld [vmem:[#allocation13 + $0x70] sm:$0xff]  ;;  %v2504_v55 = vld [vmem:[#allocation13 + $0x78] sm:$0xff] }
 0x4a6   : > { %v2253_v61 = vld [vmem:[#allocation10 + $0x70] sm:$0xff] }
 0x4a7   : > { %3241 = vmatpush3.msk.msra.mxu0 %vm1532_vm8, %v1526_v60 }
 0x4a8   : > { %3243 = vmatmul.mubr.msk.f32.vlgmr.msra.gmra.mrb[4].mxu0 %vm1528_vm9, %v1527_v62  ;;  %3245 = vmatprep.subr.mxu0 %v4131_v52  ;;  %v2254_v62 = vld [vmem:[#allocation10 + $0x78] sm:$0xff] }
 0x4a9   : > { %3246 = vmatpush3.msk.msra.mxu0 %vm1532_vm8, %v1526_v60  ;;  %3247 = vmatprep.mubr.msk.f32.mxu0 %vm4130_vm2, %v4131_v52  ;;  %v3613_v63 = vpack.c.bf16 %v2254_v62, %v2253_v61  ;;  %v2580_v61 = vld [vmem:[#allocation14 + $0x18] sm:$0xff] }
 0x4aa   : > { %3564 = vmatprep.subr.bf16.mxu0 %v4129_v51 }
 0x4ac   : > { %3248 = vmatmul.mubr.msk.f32.vlgmr.msra.gmra.mrb[6].mxu0 %vm1528_vm9, %v2885_v1  ;;  %v2256_v1 = vld [vmem:[#allocation10 + $0x88] sm:$0xff] }
 0x4ad   : > { %3566 = vmatpush3.bf16.msra.mxu0 %v3565_v2  ;;  %3264 = vmatprep.mubr.msk.f32.mxu0 %vm4130_vm2, %v4131_v52  ;;  %v3616_v2 = vpack.c.bf16 %v2256_v1, %v2255_v0  ;;  %v2582_v0 = vld [vmem:[#allocation14 + $0x28] sm:$0xff] }
 0x4ae   : > { %3567 = vmatprep.subr.bf16.mxu0 %v4129_v51 }
 0x4b1   : > { %3569 = vmatpush3.bf16.msra.mxu0 %v3568_v5  ;;  %v2257_v5 = vld [vmem:[#allocation10 + $0x90] sm:$0xff] }
 0x4b2   : > { %3570 = vmatprep.subr.bf16.mxu0 %v4129_v51 }
 0x4b5   : > { %3572 = vmatpush3.bf16.msra.mxu0 %v3571_v8  ;;  %v3619_v8 = vpack.c.bf16 %v2258_v7, %v2257_v5  ;;  %v2585_v5 = vld [vmem:[#allocation14 + $0x40] sm:$0xff] }
 0x4b6   : > { %3262 = vmatprep.subr.mxu0 %v4131_v52 }
 0x4b9   : > { %3263 = vmatpush3.msra.mxu0 %v1695_v10  ;;  %v2330_v10 = vld [vmem:[#allocation11] sm:$0xff] }
 0x4ba   : > { %3284 = vmatprep.subr.mxu0 %v4131_v52 }
 0x57b   : > { %v1602_v11 = vpop.f32.mrb[4].mxu0 }
 0x57c   : > { %v3244_v12 = vpop.f32.mrb[5].mxu0  ;;  %3282 = vmatmul.mubr.msk.f32.vlgmr.msra.gmra.mrb[12].mxu1 %vm1696_vm10, %v1602_v11 }
 0x57d   : > { %3308 = vmatprep.mubr.msk.f32.mxu1 %vm4130_vm2, %v4131_v52  ;;  %v2331_v12 = vld [vmem:[#allocation11 + $0x8] sm:$0xff] }
 0x57f   : > { %v1684_v15 = vpop.f32.mrb[6].mxu0 }
 0x580   : > { %v3249_v16 = vpop.f32.mrb[7].mxu0  ;;  %3265 = vmatmul.mubr.msk.f32.vlgmr.msra.gmra.mrb[8].mxu0 %vm1696_vm10, %v1684_v15 }
 0x581   : > { %3285 = vmatpush3.msk.msra.mxu0 %vm1532_vm8, %v1526_v60  ;;  %3286 = vmatprep.mubr.msk.f32.mxu0 %vm4130_vm2, %v4131_v52  ;;  %v3610_v60 = vpack.c.bf16 %v2252_v59, %v2251_v58  ;;  %v3628_v16 = vpack.c.bf16 %v2331_v12, %v2330_v10  ;;  %v2578_v58 = vld [vmem:[#allocation14 + $0x8] sm:$0xff]  ;;  %v2579_v59 = vld [vmem:[#allocation14 + $0x10] sm:$0xff] }
 0x582   : > { %3582 = vmatprep.subr.bf16.mxu0 %v4129_v51  ;;  %v3661_v62 = vpack.c.bf16 %v2580_v61, %v2579_v59  ;;  %v2590_v12 = vld [vmem:[#allocation14 + $0x68] sm:$0xff] }
 0x584   : > { %3287 = vmatmul.mubr.msk.f32.vlgmr.msra.gmra.mrb[10].mxu0 %vm1528_vm9, %v2890_v17  ;;  %v3622_v17 = vpack.c.bf16 %v2336_v14, %v2335_v13 }
 0x585   : > { %3584 = vmatpush3.bf16.msra.mxu0 %v3583_v18  ;;  %3303 = vmatprep.mubr.msk.f32.mxu0 %vm4130_vm2, %v4131_v52 }
 0x586   : > { %3585 = vmatprep.subr.bf16.mxu0 %v4129_v51 }
 0x589   : > { %3587 = vmatpush3.bf16.msra.mxu0 %v3586_v21  ;;  %v2333_v21 = vld [vmem:[#allocation11 + $0x18] sm:$0xff] }
 0x58a   : > { %3588 = vmatprep.subr.bf16.mxu0 %v4129_v51  ;;  %v3631_v22 = vpack.c.bf16 %v2333_v21, %v2332_v20 }
 0x58d   : > { %3590 = vmatpush3.bf16.msra.mxu0 %v3589_v24  ;;  %v2338_v24 = vld [vmem:[#allocation11 + $0x38] sm:$0xff] }
 0x58e   : > { %3301 = vmatprep.subr.mxu0 %v4131_v52 }
 0x591   : > { %3302 = vmatpush3.msra.mxu0 %v1925_v25  ;;  %v3625_v25 = vpack.c.bf16 %v2338_v24, %v2337_v23  ;;  %v2592_v23 = vld [vmem:[#allocation14 + $0x78] sm:$0xff] }
 0x592   : > { %3591 = vmatprep.subr.bf16.mxu0 %v4129_v51 }
 0x64f   : > { %v1839_v26 = vpop.f32.mrb[12].mxu1 }
 0x650   : > { %v3283_v27 = vpop.f32.mrb[13].mxu1 }
 0x651   : > { %v2490_v27 = vld [vmem:[#allocation13 + $0x8] sm:$0xff] }
 0x653   : > { %v1766_v28 = vpop.f32.mrb[8].mxu0 }
 0x654   : > { %v1840_v29 = vadd.f32 %v1839_v26, %v1766_v28  ;;  %v3266_v30 = vpop.f32.mrb[9].mxu0  ;;  %v2489_v26 = vld [vmem:[#allocation13] sm:$0xff] }
 0x655   : > { %v3634_v33 = vpack.c.bf16 %v2490_v27, %v2489_v26 }
 0x657   : > { %v1914_v31 = vpop.f32.mrb[10].mxu0 }
 0x658   : > { %v3288_v32 = vpop.f32.mrb[11].mxu0  ;;  %3304 = vmatmul.mubr.msk.f32.vlgmr.msra.gmra.mrb[12].mxu0 %vm1696_vm10, %v1914_v31 }
 0x659   : > { %3336 = vmatprep.mubr.msk.f32.mxu0 %vm4130_vm2, %v4131_v52  ;;  %3593 = vmatpush3.bf16.msra.mxu0 %v3592_v35  ;;  %v2491_v35 = vld [vmem:[#allocation13 + $0x10] sm:$0xff] }
 0x65a   : > { %3594 = vmatprep.subr.bf16.mxu0 %v4129_v51  ;;  %v3637_v37 = vpack.c.bf16 %v2492_v36, %v2491_v35 }
 0x65d   : > { %3596 = vmatpush3.bf16.msra.mxu0 %v3595_v38  ;;  %v2493_v38 = vld [vmem:[#allocation13 + $0x20] sm:$0xff] }
 0x65e   : > { %3597 = vmatprep.subr.bf16.mxu0 %v4129_v51  ;;  %v3640_v40 = vpack.c.bf16 %v2494_v39, %v2493_v38 }
 0x661   : > { %3599 = vmatpush3.bf16.msra.mxu0 %v3598_v41  ;;  %v2495_v41 = vld [vmem:[#allocation13 + $0x30] sm:$0xff] }
 0x662   : > { %3600 = vmatprep.subr.bf16.mxu0 %v4129_v51  ;;  %v3643_v43 = vpack.c.bf16 %v2496_v42, %v2495_v41 }
 0x665   : > { %3602 = vmatpush3.bf16.msra.mxu0 %v3601_v44  ;;  %v2497_v44 = vld [vmem:[#allocation13 + $0x40] sm:$0xff] }
 0x666   : > { %3603 = vmatprep.subr.bf16.mxu0 %v4129_v51 }
 0x669   : > { %3605 = vmatpush3.bf16.msra.mxu0 %v3604_v6  ;;  %v2586_v6 = vld [vmem:[#allocation14 + $0x48] sm:$0xff] }
 0x66a   : > { %3621 = vmatprep.subr.bf16.mxu0 %v4129_v51  ;;  %v3670_v7 = vpack.c.bf16 %v2586_v6, %v2585_v5 }
 0x72b   : > { %v1995_v45 = vpop.f32.mrb[12].mxu0 }
 0x72c   : > { %v1999_v47 = vadd.f32 %v1995_v45, %v1840_v29  ;;  %v3305_v48 = vpop.f32.mrb[13].mxu0  ;;  %v2498_v45 = vld [vmem:[#allocation13 + $0x48] sm:$0xff] }
 0x72e   : > { %v2007_v49 = vadd.f32 %v2894_v46, %v1999_v47  ;;  %v3646_v46 = vpack.c.bf16 %v2498_v45, %v2497_v44  ;;  %v2500_v47 = vld [vmem:[#allocation13 + $0x58] sm:$0xff] }
 0x730   : > { %v2008_v50 = vmax.f32 %v2007_v49, 0.0  ;;  %v2501_v49 = vld [vmem:[#allocation13 + $0x60] sm:$0xff] }
 0x732   : > { %3307 = vmatpush3.msk.msra.mxu1 %vm2014_vm11, %v2008_v50 }
 0x733   : > { %3309 = vmatmul.mubr.msk.f32.vlgmr.msra.gmra.mrb[14].mxu1 %vm2010_vm12, %v2009_v53  ;;  %3311 = vmatprep.subr.mxu1 %v4131_v52 }
 0x734   : > { %3312 = vmatpush3.msk.msra.mxu1 %vm2014_vm11, %v2008_v50  ;;  %3313 = vmatprep.mubr.msk.f32.mxu1 %vm4130_vm2, %v4131_v52  ;;  %v2502_v50 = vld [vmem:[#allocation13 + $0x68] sm:$0xff] }
 0x735   : > { %3606 = vmatprep.subr.bf16.mxu1 %v4129_v51  ;;  %v3652_v53 = vpack.c.bf16 %v2502_v50, %v2501_v49 }
 0x737   : > { %3314 = vmatmul.mubr.msk.f32.vlgmr.msra.gmra.mrb[16].mxu1 %vm2010_vm12, %v2897_v56  ;;  %v3655_v56 = vpack.c.bf16 %v2504_v55, %v2503_v54 }
 0x738   : > { %3608 = vmatpush3.bf16.msra.mxu1 %v3607_v57  ;;  %3359 = vmatprep.mubr.msk.f32.mxu1 %vm4130_vm2, %v4131_v52  ;;  %v2577_v57 = vld [vmem:[#allocation14] sm:$0xff] }
 0x739   : > { %3609 = vmatprep.subr.bf16.mxu1 %v4129_v51 }
 0x73c   : > { %3611 = vmatpush3.bf16.msra.mxu1 %v3610_v60  ;;  %v3658_v60 = vpack.c.bf16 %v2578_v58, %v2577_v57 }
 0x73d   : > { %3612 = vmatprep.subr.bf16.mxu1 %v4129_v51 }
 0x740   : > { %3614 = vmatpush3.bf16.msra.mxu1 %v3613_v63  ;;  %v2581_v63 = vld [vmem:[#allocation14 + $0x20] sm:$0xff] }
 0x741   : > { %3615 = vmatprep.subr.bf16.mxu1 %v4129_v51  ;;  %v3664_v1 = vpack.c.bf16 %v2582_v0, %v2581_v63 }
 0x744   : > { %3617 = vmatpush3.bf16.msra.mxu1 %v3616_v2  ;;  %v2583_v2 = vld [vmem:[#allocation14 + $0x30] sm:$0xff] }
 0x745   : > { %3618 = vmatprep.subr.bf16.mxu1 %v4129_v51  ;;  %v3667_v4 = vpack.c.bf16 %v2584_v3, %v2583_v2 }
 0x748   : > { %3620 = vmatpush3.bf16.msra.mxu1 %v3619_v8  ;;  %v2587_v8 = vld [vmem:[#allocation14 + $0x50] sm:$0xff] }
 0x749   : > { %3627 = vmatprep.subr.bf16.mxu1 %v4129_v51 }
 0x806   : > { %v2084_v9 = vpop.f32.mrb[14].mxu1 }
 0x807   : > { %v3310_v11 = vpop.f32.mrb[15].mxu1 }
 0x808   : > { %v2589_v11 = vld [vmem:[#allocation14 + $0x60] sm:$0xff] }
 0x809   : > { %v3676_v13 = vpack.c.bf16 %v2590_v12, %v2589_v11 }
 0x80a   : > { %v2159_v15 = vpop.f32.mrb[16].mxu1 }
 0x80b   : > { %v2163_v18 = vmax.f32 %v2084_v9, %v2159_v15  ;;  %v3315_v19 = vpop.f32.mrb[17].mxu1  ;;  %v2588_v9 = vld [vmem:[#allocation14 + $0x58] sm:$0xff] }
 0x80c   : > { %v3673_v10 = vpack.c.bf16 %v2588_v9, %v2587_v8 }
 0x80d   : > { %3337 = vmatmul.mubr.msk.f32.vlgmr.msra.gmra.mrb[14].mxu0 %vm2174_vm13, %v2163_v18  ;;  %3360 = vmatmul.mubr.msk.f32.vlgmr.msra.gmra.mrb[18].mxu1 %vm2174_vm13, %v2163_v18 }
 0x80e   : > { %3629 = vmatpush3.bf16.msra.mxu1 %v3628_v16  ;;  %3623 = vmatpush3.bf16.msra.mxu0 %v3622_v17  ;;  %v2486_v17 = vld [vmem:[%s4857_s12] sm:$0x1] }
 0x80f   : > { %3630 = vmatprep.subr.bf16.mxu1 %v4129_v51  ;;  %3624 = vmatprep.subr.bf16.mxu0 %v4129_v51 }
 0x810   : > { %3381 = vmatprep.mubr.msk.f32.mxu1 %vm4130_vm2, %v4131_v52  ;;  %3370 = vmatprep.mubr.msk.f32.mxu0 %vm4130_vm2, %v4131_v52 }
 0x812   : > { %3632 = vmatpush3.bf16.msra.mxu1 %v3631_v22  ;;  %3626 = vmatpush3.bf16.msra.mxu0 %v3625_v25  ;;  %v2591_v22 = vld [vmem:[#allocation14 + $0x70] sm:$0xff] }
 0x813   : > { %3657 = vmatprep.subr.bf16.mxu1 %v4129_v51  ;;  %3633 = vmatprep.subr.bf16.mxu0 %v4129_v51  ;;  %v3679_v24 = vpack.c.bf16 %v2592_v23, %v2591_v22 }
 0x8e0   : > { %v2244_v28 = vpop.f32.mrb[14].mxu0  ;;  %v2325_v29 = vpop.f32.mrb[18].mxu1 }
 0x8e1   : > { %v2329_v30 = vmax.f32 %v2244_v28, %v2325_v29  ;;  %v3338_v31 = vpop.f32.mrb[15].mxu0  ;;  %v3361_v32 = vpop.f32.mrb[19].mxu1  ;;  %v2593_v29 = vld [vmem:[%s4915_s26] sm:$0x1] }
 0x8e3   : > { %v2340_v34 = vrot.slane %v2329_v30, 1  ;;  %3382 = vmatmul.mubr.msk.f32.vlgmr.msra.gmra.mrb[20].mxu1 %vm2341_vm14, %v2329_v30 }
 0x8e4   : > { %3451 = vmatprep.mubr.msk.f32.mxu1 %vm4130_vm2, %v4131_v52  ;;  %3659 = vmatpush3.bf16.msra.mxu1 %v3658_v60 }
 0x8e5   : > { %3371 = vmatmul.mubr.msk.f32.vlgmr.msra.gmra.mrb[16].mxu0 %vm2341_vm14, %v2340_v34  ;;  %3660 = vmatprep.subr.bf16.mxu1 %v4129_v51 }
 0x8e6   : > { %3635 = vmatpush3.bf16.msra.mxu0 %v3634_v33  ;;  %3416 = vmatprep.mubr.msk.f32.mxu0 %vm4130_vm2, %v4131_v52  ;;  %v2499_v52 = vld [vmem:[#allocation13 + $0x50] sm:$0xff] }
 0x8e7   : > { %3636 = vmatprep.subr.bf16.mxu0 %v4129_v51  ;;  %v3649_v48 = vpack.c.bf16 %v2500_v47, %v2499_v52 }
 0x8e8   : > { %3662 = vmatpush3.bf16.msra.mxu1 %v3661_v62 }
 0x8e9   : > { %3663 = vmatprep.subr.bf16.mxu1 %v4129_v51 }
 0x8ea   : > { %3638 = vmatpush3.bf16.msra.mxu0 %v3637_v37 }
 0x8eb   : > { %3639 = vmatprep.subr.bf16.mxu0 %v4129_v51 }
 0x8ec   : > { %3665 = vmatpush3.bf16.msra.mxu1 %v3664_v1 }
 0x8ed   : > { %3666 = vmatprep.subr.bf16.mxu1 %v4129_v51 }
 0x8ee   : > { %3641 = vmatpush3.bf16.msra.mxu0 %v3640_v40 }
 0x8ef   : > { %3642 = vmatprep.subr.bf16.mxu0 %v4129_v51 }
 0x8f0   : > { %3668 = vmatpush3.bf16.msra.mxu1 %v3667_v4 }
 0x8f1   : > { %3669 = vmatprep.subr.bf16.mxu1 %v4129_v51 }
 0x8f2   : > { %3644 = vmatpush3.bf16.msra.mxu0 %v3643_v43 }
 0x8f3   : > { %3645 = vmatprep.subr.bf16.mxu0 %v4129_v51 }
 0x8f4   : > { %3671 = vmatpush3.bf16.msra.mxu1 %v3670_v7 }
 0x8f5   : > { %3672 = vmatprep.subr.bf16.mxu1 %v4129_v51 }
 0x8f6   : > { %3647 = vmatpush3.bf16.msra.mxu0 %v3646_v46 }
 0x8f7   : > { %3648 = vmatprep.subr.bf16.mxu0 %v4129_v51 }
 0x8f8   : > { %3674 = vmatpush3.bf16.msra.mxu1 %v3673_v10 }
 0x8f9   : > { %3675 = vmatprep.subr.bf16.mxu1 %v4129_v51 }
 0x8fa   : > { %3650 = vmatpush3.bf16.msra.mxu0 %v3649_v48 }
 0x8fb   : > { %3651 = vmatprep.subr.bf16.mxu0 %v4129_v51 }
 0x8fc   : > { %3677 = vmatpush3.bf16.msra.mxu1 %v3676_v13 }
 0x8fd   : > { %3678 = vmatprep.subr.bf16.mxu1 %v4129_v51 }
 0x8fe   : > { %3653 = vmatpush3.bf16.msra.mxu0 %v3652_v53 }
 0x8ff   : > { %3654 = vmatprep.subr.bf16.mxu0 %v4129_v51  ;;  %v2505_v51 = vld [vmem:[%s4913_s21] sm:$0x1] }
 0x900   : > { %3680 = vmatpush3.bf16.msra.mxu1 %v3679_v24 }
 0x902   : > { %3656 = vmatpush3.bf16.msra.mxu0 %v3655_v56 }
 0x9b6   : > { %v2482_v14 = vpop.f32.mrb[20].mxu1 }
 0x9b7   : > { %v3383_v15 = vpop.f32.mrb[21].mxu1 }
 0x9b8   : > { %v2410_v16 = vpop.f32.mrb[16].mxu0 }
 0x9b9   : > { %v2483_v18 = vadd.f32 %v2482_v14, %v2410_v16  ;;  %v3372_v19 = vpop.f32.mrb[17].mxu0 }
 0x9bb   : > { %v2487_v20 = vadd.f32 %v2486_v17, %v2483_v18 }
 0x9bd   : > { %v2488_v21 = vmax.f32 %v2487_v20, 0.0 }
 0x9bf   : > { %3417 = vmatmul.mubr.f32.vlgmr.msra.gmra.mrb[18].mxu0 %v2488_v21 }
 0xa92   : > { %v2572_v25 = vpop.f32.mrb[18].mxu0 }
 0xa93   : > { %v2573_v26 = vadd.f32 %v2572_v25, %v2505_v51  ;;  %v3418_v27 = vpop.f32.mrb[19].mxu0 }
 0xa95   : > { %v2576_v28 = vmax.f32 %v2573_v26, 0.0 }
 0xa97   : > { %3452 = vmatmul.mubr.f32.vlgmr.msra.gmra.mrb[22].mxu1 %v2576_v28 }
 0xb6a   : > { %v2660_v30 = vpop.f32.mrb[22].mxu1 }
 0xb6b   : > { %v2661_v31 = vadd.f32 %v2660_v30, %v2593_v29  ;;  %v3453_v32 = vpop.f32.mrb[23].mxu1 }
 0xb6d   : > { %2664 = vst [vmem:[%s655_s25] sm:$0x1] %v2661_v31 }
 0xb6e   : > { %4048 = shalt.err (!%p4045_p9)
}
 0xb6f   : > { %s4049_s21 = scalar_lea.hbm %s4803_s27, 16  ;;  %s4053_s19 = scalar_lea.hbm %s4917_s3, 32 }
 0xb70   : > { %p4050_p12 = scmp.ne.s32.totalorder %s4803_s27, %s4049_s21  ;;  %p4054_p3 = scmp.lt.u32.totalorder %s4803_s27, %s4917_s3 }
 0xb71   : > { %p4055_p4 = scmp.lt.u32.totalorder %s4053_s19, %s4049_s21  ;;  %p4057_p8 = scmp.lt.u32.totalorder %s4049_s21, %s4803_s27 }
 0xb72   : > { %p4051_p10 = pnand %p4050_p12, %p4918_p11 }
 0xb73   : > { %p4056_p7 = por %p4055_p4, %p4054_p3 }
 0xb74   : > { %p4052_p2 = pneg %p4051_p10 }
 0xb75   : > { %p4058_p13 = por %p4057_p8, %p4056_p7 }
 0xb77   : > { %p4059_p0 = pnand %p4058_p13, %p4052_p2 }
 0xb79   : > { %4062 = shalt.err (!%p4059_p0)
}
 0xb7a   : > { %3717 = dma.vmem_to_hbm [thread:$0]  (%p4918_p11), %s4805_s20, 16, %s4803_s27, %s2666_s18  }
 0xb7b PF: > { %s4919_s25 = sld [smem:[#allocation26_spill]]  ;;  %s4920_s30 = sld [smem:[#allocation23_spill]] }
 0xb7c   : > { %s4921_s0 = sld [smem:[#allocation30_spill]] }
 0xb81   : > { %p3764_p1 = scmp.ge.s32.totalorder %s4919_s25, 2  ;;  %s2690_s24 = sand.u32 1, %s4920_s30  }
 0xb82   : > { %p4922_p6 = scmp.ne.s32.totalorder %s4921_s0, 0  ;;  %s2691_s22 = scalar_lea.sflag [#allocation4], %s2690_s24 }
 0xb84   : > { %p3745_p5 = pnand %p3764_p1, %p4922_p6 }
 0xb86   : > { %4100 = dma.done.wait (!%p3745_p5), %s2691_s22, 16  }
 0xb87   : > { %4102 = vsyncadd (!%p3745_p5), %s2691_s22, 4294967280  ;;  %s4923_s27 = sld [smem:[#allocation27_spill]]  ;;  %s4924_s24 = sld [smem:[#allocation24_spill]] }
 0xb88   : > { %s4925_s25 = sld [smem:[#allocation25_spill]]  ;;  %s4926_s26 = sld [smem:[#allocation28_spill]] }
 0xb8d   : > { %p32_p9 = scmp.ge.s32.totalorder %s4923_s27, 4  }
 0xb8f   :  { %34 = sbr.rel (!%p32_p9) target bundleno = 16 (0x10), region = 169 }
 0xb96   :  { %2695 = vsyncpa [#allocation3], 1 }
 0xb97   :  { %2697 = vsyncpa [#allocation3 + $0x1], 1 }
 0xb98   :  { %2698 = vsyncpa [#allocation6], 1 }
 0xb99   :  { %2699 = vsyncpa [#allocation9], 1 }
 0xb9a   :  { %2700 = vsyncpa [#allocation12], 1 }
 0xb9b   :  { %2701 = vsyncpa [#allocation15], 1 }
 0xb9c   :  { %2702 = vsyncpa [#allocation4], 1 }
 0xb9d   :  { %2704 = vsyncpa [#allocation4 + $0x1], 1 }

</bundles_post_ra>
